<compile_context>
chip_gen: v6e
topology: v6e:2x2x1
jax: 0.10.0
libtpu: 0.0.40
codegen_flags: <defaults>
</compile_context>

<pallas_src>
import functools
import math

import jax
import jax.numpy as jnp
from jax import lax
from jax.experimental import pallas as pl
from jax.experimental.pallas import tpu as pltpu


def _round_up(x, m):
    return (x + m - 1) // m * m


def _images_per_step(n, p):
    """Images per grid step: amortize per-step pipeline overhead (~0.35us) when
    H*W is tiny, but keep >= 2 grid steps so both v7x TensorCores get work."""
    target = max(1, 1024 // p)
    best = 1
    for nb in range(1, min(n, target) + 1):
        if n % nb == 0 and (n // nb >= 2 or n == 1):
            best = nb
    return best


def _vmem_limit_bytes(nb, c, p, cout_p, taps_per_group, dot_dtype):
    ds = jnp.dtype(dot_dtype).itemsize
    est = (
        2 * nb * c * p * 4                     # x block, double-buffered
        + 2 * nb * cout_p * p * 4              # output block, double-buffered
        + 2 * (18 * c * c + cout_p * c) * ds   # w_att (2C,9C) + w_head, double-buffered
        + 4 * (9 * p + 2 * c + cout_p)         # masks + biases
        + taps_per_group * c * p * ds          # stacked shifted copies
        + 2 * c * p * (4 + ds)                 # att accumulator + gates
        + 2 * c * p * 4                        # rolled copy / activation temporaries
    )
    est = int(2 * est)                         # headroom for compiler temporaries
    return max(32 * 2 ** 20, min(est, 64 * 2 ** 20))


def _attn_head_kernel(x_ref, mask_ref, w_att_ref, b_att_ref,
                      w_head_ref, b_head_ref, out_ref,
                      *, W, Ccmap_p, taps_per_group):
    """One grid step: Nb images, fused 3x3 attention convs + gating + 1x1 heads."""
    Nb, C, P = x_ref.shape
    dot_dtype = w_att_ref.dtype
    n_groups = 9 // taps_per_group

    # Weights / biases loaded once per grid step (constant index maps).
    w_att = w_att_ref[...]                       # (2C, 9C) dot_dtype
    b_att = b_att_ref[...]                       # (2C, 1)  f32
    w_head = w_head_ref[...]                     # (Cout_p, C) dot_dtype
    b_head = b_head_ref[...]                     # (Cout_p, 1) f32
    w_head_c, w_head_p = w_head[:Ccmap_p], w_head[Ccmap_p:]
    b_head_c, b_head_p = b_head[:Ccmap_p], b_head[Ccmap_p:]

    for i in range(Nb):                          # static unroll over images in block
        x = x_ref[i]                             # (C, P) f32, pixels on lanes

        # --- fused 3x3 attention convs: per tap group, stack the lane-rolled +
        #     border-masked copies and do ONE deep (2C, gC) @ (gC, P) MXU matmul
        #     with f32 accumulation.  Masks are a single vmul per tap. ---
        att = None
        for g in range(n_groups):
            parts = []
            for t in range(taps_per_group):
                k = g * taps_per_group + t
                dy, dx = k // 3 - 1, k % 3 - 1
                d = dy * W + dx                  # flattened pixel offset of this tap
                if d == 0:
                    xs = x                       # center tap: mask is all-ones
                else:
                    # xs[c, p] = x[c, p + d]; wrap-around zeroed by the border mask.
                    xs = pltpu.roll(x, shift=(-d) % P, axis=1) * mask_ref[k:k + 1]
                parts.append(xs.astype(dot_dtype))
            stack = parts[0] if len(parts) == 1 else jnp.concatenate(parts, axis=0)
            w_g = w_att[:, g * taps_per_group * C:(g + 1) * taps_per_group * C]
            contrib = jnp.dot(w_g, stack, preferred_element_type=jnp.float32)
            att = contrib if att is None else att + contrib
        att = att + b_att                        # (2C, P), bias broadcast over lanes

        # --- gating (EUP tanh; sigmoid via tanh, no divide / inf intermediates)
        #     + fused 1x1 heads, stored DIRECTLY into sublane-aligned slices of
        #     the lane-dense output block (no concat copy). ---
        gate_c = (x * (0.5 * jnp.tanh(0.5 * att[:C]) + 0.5)).astype(dot_dtype)
        gate_p = (x * jnp.tanh(att[C:])).astype(dot_dtype)
        out_c = jnp.dot(w_head_c, gate_c, preferred_element_type=jnp.float32)
        out_p = jnp.dot(w_head_p, gate_p, preferred_element_type=jnp.float32)
        out_ref[i, :Ccmap_p] = (out_c + b_head_c).astype(out_ref.dtype)
        out_ref[i, Ccmap_p:] = (out_p + b_head_p).astype(out_ref.dtype)


def make_cmap_paf_head_attention(w_cmap_att, b_cmap_att, w_paf_att, b_paf_att,
                                 w_cmap, b_cmap, w_paf, b_paf,
                                 *, H, W, dot_dtype=jnp.bfloat16):
    """Build a jitted forward for CmapPafHeadAttention (num_upsample=0).

    All weight re-layout / padding / border-mask construction is hoisted here
    (done once), so the per-call path is just the pallas_call + free reshapes.

    w_*_att : (C, C, 3, 3) PyTorch OIHW 3x3 attention conv weights
    w_cmap  : (Ccmap, C) 1x1 head weight (squeezed from (Ccmap, C, 1, 1)); w_paf likewise
    Returns forward(x: (N, C, H, W) f32) -> (cmap, paf) in NCHW.
    """
    C = w_cmap_att.shape[0]
    Ccmap, Cpaf = w_cmap.shape[0], w_paf.shape[0]
    Ccmap_p, Cpaf_p = _round_up(Ccmap, 8), _round_up(Cpaf, 8)
    Cout_p = Ccmap_p + Cpaf_p
    P = H * W

    # Stacked attention weights in the consolidated-matmul layout:
    # (2C, C, 3, 3) -> (2C, 3, 3, C) -> (2C, 9C)  (tap-major columns).
    w_att = jnp.concatenate([w_cmap_att, w_paf_att], axis=0)
    w_att2d = jnp.transpose(w_att, (0, 2, 3, 1)).reshape(2 * C, 9 * C).astype(dot_dtype)
    b_att = jnp.concatenate([b_cmap_att, b_paf_att], axis=0)
    b_att = b_att.reshape(2 * C, 1).astype(jnp.float32)

    # Fused 1x1 head weights/bias, rows padded to multiples of 8 (sublane axis).
    w_head = jnp.zeros((Cout_p, C), dot_dtype)
    w_head = w_head.at[:Ccmap].set(w_cmap.astype(dot_dtype))
    w_head = w_head.at[Ccmap_p:Ccmap_p + Cpaf].set(w_paf.astype(dot_dtype))
    b_head = jnp.zeros((Cout_p, 1), jnp.float32)
    b_head = b_head.at[:Ccmap, 0].set(b_cmap)
    b_head = b_head.at[Ccmap_p:Ccmap_p + Cpaf, 0].set(b_paf)

    # Precomputed f32 border masks, one (P,) row per 3x3 tap (applied as 1 vmul).
    row = jnp.arange(H, dtype=jnp.int32)[:, None]
    col = jnp.arange(W, dtype=jnp.int32)[None, :]
    mask_rows = []
    for k in range(9):
        dy, dx = k // 3 - 1, k % 3 - 1
        valid = (col + dx >= 0) & (col + dx < W) & (row + dy >= 0) & (row + dy < H)
        mask_rows.append(valid.reshape(P))
    masks = jnp.stack(mask_rows, axis=0).astype(jnp.float32)   # (9, P)

    # Tap grouping: fill the MXU K dim (128 on v5e, 256 on v6e/v7x) without the
    # stacked-copy buffer blowing up at large C (use 3-tap groups when C >= 128).
    taps_per_group = 9 if 9 * C <= 1152 else 3

    kernel = functools.partial(_attn_head_kernel, W=W, Ccmap_p=Ccmap_p,
                               taps_per_group=taps_per_group)
    dsize = jnp.dtype(dot_dtype).itemsize

    @jax.jit
    def forward(x):
        N = x.shape[0]
        assert x.shape == (N, C, H, W)
        nb = _images_per_step(N, P)
        x_flat = x.reshape(N, C, P)          # contiguous NCHW, free reshape

        cost = pl.CostEstimate(
            flops=2 * N * P * C * (9 * 2 * C + Cout_p),
            transcendentals=2 * N * C * P,
            bytes_accessed=(4 * N * P * (C + Cout_p)
                            + dsize * (w_att2d.size + w_head.size)
                            + 4 * (b_att.size + b_head.size + masks.size)),
        )

        out = pl.pallas_call(
            kernel,
            out_shape=jax.ShapeDtypeStruct((N, Cout_p, P), jnp.float32),
            grid_spec=pltpu.PrefetchScalarGridSpec(
                num_scalar_prefetch=0,
                grid=(N // nb,),
                in_specs=[
                    pl.BlockSpec((nb, C, P), lambda n: (n, 0, 0)),      # x block
                    pl.BlockSpec((9, P), lambda n: (0, 0)),             # border masks
                    pl.BlockSpec((2 * C, 9 * C), lambda n: (0, 0)),     # att weights
                    pl.BlockSpec((2 * C, 1), lambda n: (0, 0)),         # att bias
                    pl.BlockSpec((Cout_p, C), lambda n: (0, 0)),        # head weights
                    pl.BlockSpec((Cout_p, 1), lambda n: (0, 0)),        # head bias
                ],
                out_specs=pl.BlockSpec((nb, Cout_p, P), lambda n: (n, 0, 0)),
            ),
            compiler_params=pltpu.CompilerParams(
                dimension_semantics=("parallel",),
                vmem_limit_bytes=_vmem_limit_bytes(nb, C, P, Cout_p,
                                                   taps_per_group, dot_dtype),
            ),
            cost_estimate=cost,
        )(x_flat, masks, w_att2d, b_att, w_head, b_head)

        out = out.reshape(N, Cout_p, H, W)   # already NCHW, free reshape
        return out[:, :Ccmap], out[:, Ccmap_p:Ccmap_p + Cpaf]

    return forward


def init_params(key, C, cmap_channels, paf_channels):
    """Synthetic init mirroring the module's _init_weights.

    Conv weights: kaiming_normal(fan_out, relu) -> std = sqrt(2 / (out_ch*kh*kw)).
    Conv biases : PyTorch default U(-1/sqrt(fan_in), 1/sqrt(fan_in)).
    """
    ks = jax.random.split(key, 8)
    std_att = math.sqrt(2.0 / (C * 9))
    std_c = math.sqrt(2.0 / cmap_channels)
    std_p = math.sqrt(2.0 / paf_channels)
    b_att_bound = 1.0 / math.sqrt(C * 9)
    b_head_bound = 1.0 / math.sqrt(C)
    w_cmap_att = std_att * jax.random.normal(ks[0], (C, C, 3, 3), jnp.float32)
    w_paf_att = std_att * jax.random.normal(ks[1], (C, C, 3, 3), jnp.float32)
    w_cmap = std_c * jax.random.normal(ks[2], (cmap_channels, C), jnp.float32)
    w_paf = std_p * jax.random.normal(ks[3], (paf_channels, C), jnp.float32)
    b_cmap_att = jax.random.uniform(ks[4], (C,), jnp.float32, -b_att_bound, b_att_bound)
    b_paf_att = jax.random.uniform(ks[5], (C,), jnp.float32, -b_att_bound, b_att_bound)
    b_cmap = jax.random.uniform(ks[6], (cmap_channels,), jnp.float32, -b_head_bound, b_head_bound)
    b_paf = jax.random.uniform(ks[7], (paf_channels,), jnp.float32, -b_head_bound, b_head_bound)
    return (w_cmap_att, b_cmap_att, w_paf_att, b_paf_att,
            w_cmap, b_cmap, w_paf, b_paf)


if __name__ == "__main__":
    key = jax.random.PRNGKey(0)
    kx, kp = jax.random.split(key)

    # With num_upsample=0 the module requires input_channels == upsample_channels.
    N, C, H, W = 4, 32, 16, 16
    cmap_channels, paf_channels = 18, 42

    x = jax.random.normal(kx, (N, C, H, W), jnp.float32)
    params = init_params(kp, C, cmap_channels, paf_channels)
    (w_cmap_att, b_cmap_att, w_paf_att, b_paf_att,
     w_cmap, b_cmap, w_paf, b_paf) = params

    # Pure-JAX reference of the PyTorch forward.
    def conv2d(inp, w, b, pad):
        y = lax.conv_general_dilated(
            inp, w, window_strides=(1, 1), padding=[(pad, pad), (pad, pad)],
            dimension_numbers=("NCHW", "OIHW", "NCHW"))
        return y + b[None, :, None, None]

    ac = jax.nn.sigmoid(conv2d(x, w_cmap_att, b_cmap_att, 1))
    ap = jnp.tanh(conv2d(x, w_paf_att, b_paf_att, 1))
    cmap_ref = conv2d(x * ac, w_cmap[:, :, None, None], b_cmap, 0)
    paf_ref = conv2d(x * ap, w_paf[:, :, None, None], b_paf, 0)

    # (1) f32 MXU operands: tight semantics check against the f32 reference.
    fwd_f32 = make_cmap_paf_head_attention(*params, H=H, W=W, dot_dtype=jnp.float32)
    cmap32, paf32 = jax.block_until_ready(fwd_f32(x))
    assert cmap32.shape == (N, cmap_channels, H, W)
    assert paf32.shape == (N, paf_channels, H, W)
    assert jnp.allclose(cmap32, cmap_ref, atol=1e-3, rtol=1e-3), float(
        jnp.max(jnp.abs(cmap32 - cmap_ref)))
    assert jnp.allclose(paf32, paf_ref, atol=1e-3, rtol=1e-3), float(
        jnp.max(jnp.abs(paf32 - paf_ref)))

    # (2) bf16 MXU operands (default / fast path): looser tolerance for the
    #     bf16 operand rounding; accumulation stays f32 in-kernel.
    fwd_bf16 = make_cmap_paf_head_attention(*params, H=H, W=W)
    cmap16, paf16 = jax.block_until_ready(fwd_bf16(x))
    assert jnp.allclose(cmap16, cmap_ref, atol=5e-2, rtol=5e-2), float(
        jnp.max(jnp.abs(cmap16 - cmap_ref)))
    assert jnp.allclose(paf16, paf_ref, atol=5e-2, rtol=5e-2), float(
        jnp.max(jnp.abs(paf16 - paf_ref)))

    print("KERNEL_OK")
</pallas_src>

<mosaic_0001>
module attributes {stable_mosaic.version = 11 : i64} {
  func.func @_attn_head_kernel(%arg0: i32, %arg1: memref<2x32x256xf32, #tpu.memory_space<vmem>>, %arg2: memref<9x256xf32, #tpu.memory_space<vmem>>, %arg3: memref<64x288xf32, #tpu.memory_space<vmem>>, %arg4: memref<64x1xf32, #tpu.memory_space<vmem>>, %arg5: memref<72x32xf32, #tpu.memory_space<vmem>>, %arg6: memref<72x1xf32, #tpu.memory_space<vmem>>, %arg7: memref<2x72x256xf32, #tpu.memory_space<vmem>>) attributes {dimension_semantics = [#tpu.dimension_semantics<parallel>], iteration_bounds = array<i64: 2>, scalar_prefetch = 0 : i64, scratch_operands = 0 : i64, tpu.core_type = #tpu.core_type<tc>, window_params = [{transform_indices = @transform_0, window_bounds = array<i64: 2, 32, 256>}, {pipeline_mode = #tpu.pipeline_mode<synchronous>, transform_indices = @transform_1, window_bounds = array<i64: 9, 256>}, {pipeline_mode = #tpu.pipeline_mode<synchronous>, transform_indices = @transform_2, window_bounds = array<i64: 64, 288>}, {pipeline_mode = #tpu.pipeline_mode<synchronous>, transform_indices = @transform_3, window_bounds = array<i64: 64, 1>}, {pipeline_mode = #tpu.pipeline_mode<synchronous>, transform_indices = @transform_4, window_bounds = array<i64: 72, 32>}, {pipeline_mode = #tpu.pipeline_mode<synchronous>, transform_indices = @transform_5, window_bounds = array<i64: 72, 1>}, {transform_indices = @transform_6, window_bounds = array<i64: 2, 72, 256>}]} {
    %c0 = arith.constant 0 : index
    %c0_0 = arith.constant 0 : index
    %0 = vector.load %arg3[%c0, %c0_0] : memref<64x288xf32, #tpu.memory_space<vmem>>, vector<64x288xf32>
    %c0_1 = arith.constant 0 : index
    %c0_2 = arith.constant 0 : index
    %1 = vector.load %arg4[%c0_1, %c0_2] : memref<64x1xf32, #tpu.memory_space<vmem>>, vector<64x1xf32>
    %c0_3 = arith.constant 0 : index
    %c0_4 = arith.constant 0 : index
    %2 = vector.load %arg5[%c0_3, %c0_4] : memref<72x32xf32, #tpu.memory_space<vmem>>, vector<72x32xf32>
    %c0_5 = arith.constant 0 : index
    %c0_6 = arith.constant 0 : index
    %3 = vector.load %arg6[%c0_5, %c0_6] : memref<72x1xf32, #tpu.memory_space<vmem>>, vector<72x1xf32>
    %4 = vector.extract_strided_slice %2 {offsets = [0, 0], sizes = [24, 32], strides = [1, 1]} : vector<72x32xf32> to vector<24x32xf32>
    %5 = vector.extract_strided_slice %2 {offsets = [24, 0], sizes = [48, 32], strides = [1, 1]} : vector<72x32xf32> to vector<48x32xf32>
    %6 = vector.extract_strided_slice %3 {offsets = [0, 0], sizes = [24, 1], strides = [1, 1]} : vector<72x1xf32> to vector<24x1xf32>
    %7 = vector.extract_strided_slice %3 {offsets = [24, 0], sizes = [48, 1], strides = [1, 1]} : vector<72x1xf32> to vector<48x1xf32>
    %c0_7 = arith.constant 0 : index
    %c0_8 = arith.constant 0 : index
    %c0_9 = arith.constant 0 : index
    %8 = vector.load %arg1[%c0_7, %c0_8, %c0_9] : memref<2x32x256xf32, #tpu.memory_space<vmem>>, vector<1x32x256xf32>
    %9 = vector.shape_cast %8 : vector<1x32x256xf32> to vector<32x256xf32>
    %c17_i32 = arith.constant 17 : i32
    %10 = tpu.dynamic_rotate %9 by %c17_i32 dim 1 : vector<32x256xf32>, i32 -> vector<32x256xf32>
    %c0_10 = arith.constant 0 : index
    %c0_11 = arith.constant 0 : index
    %11 = vector.load %arg2[%c0_10, %c0_11] : memref<9x256xf32, #tpu.memory_space<vmem>>, vector<1x256xf32>
    %12 = vector.broadcast %11 : vector<1x256xf32> to vector<32x256xf32>
    %13 = arith.mulf %10, %12 : vector<32x256xf32>
    %c16_i32 = arith.constant 16 : i32
    %14 = tpu.dynamic_rotate %9 by %c16_i32 dim 1 : vector<32x256xf32>, i32 -> vector<32x256xf32>
    %c1 = arith.constant 1 : index
    %c0_12 = arith.constant 0 : index
    %15 = vector.load %arg2[%c1, %c0_12] : memref<9x256xf32, #tpu.memory_space<vmem>>, vector<1x256xf32>
    %16 = vector.broadcast %15 : vector<1x256xf32> to vector<32x256xf32>
    %17 = arith.mulf %14, %16 : vector<32x256xf32>
    %c15_i32 = arith.constant 15 : i32
    %18 = tpu.dynamic_rotate %9 by %c15_i32 dim 1 : vector<32x256xf32>, i32 -> vector<32x256xf32>
    %c2 = arith.constant 2 : index
    %c0_13 = arith.constant 0 : index
    %19 = vector.load %arg2[%c2, %c0_13] : memref<9x256xf32, #tpu.memory_space<vmem>>, vector<1x256xf32>
    %20 = vector.broadcast %19 : vector<1x256xf32> to vector<32x256xf32>
    %21 = arith.mulf %18, %20 : vector<32x256xf32>
    %c1_i32 = arith.constant 1 : i32
    %22 = tpu.dynamic_rotate %9 by %c1_i32 dim 1 : vector<32x256xf32>, i32 -> vector<32x256xf32>
    %c3 = arith.constant 3 : index
    %c0_14 = arith.constant 0 : index
    %23 = vector.load %arg2[%c3, %c0_14] : memref<9x256xf32, #tpu.memory_space<vmem>>, vector<1x256xf32>
    %24 = vector.broadcast %23 : vector<1x256xf32> to vector<32x256xf32>
    %25 = arith.mulf %22, %24 : vector<32x256xf32>
    %c255_i32 = arith.constant 255 : i32
    %26 = tpu.dynamic_rotate %9 by %c255_i32 dim 1 : vector<32x256xf32>, i32 -> vector<32x256xf32>
    %c5 = arith.constant 5 : index
    %c0_15 = arith.constant 0 : index
    %27 = vector.load %arg2[%c5, %c0_15] : memref<9x256xf32, #tpu.memory_space<vmem>>, vector<1x256xf32>
    %28 = vector.broadcast %27 : vector<1x256xf32> to vector<32x256xf32>
    %29 = arith.mulf %26, %28 : vector<32x256xf32>
    %c241_i32 = arith.constant 241 : i32
    %30 = tpu.dynamic_rotate %9 by %c241_i32 dim 1 : vector<32x256xf32>, i32 -> vector<32x256xf32>
    %c6 = arith.constant 6 : index
    %c0_16 = arith.constant 0 : index
    %31 = vector.load %arg2[%c6, %c0_16] : memref<9x256xf32, #tpu.memory_space<vmem>>, vector<1x256xf32>
    %32 = vector.broadcast %31 : vector<1x256xf32> to vector<32x256xf32>
    %33 = arith.mulf %30, %32 : vector<32x256xf32>
    %c240_i32 = arith.constant 240 : i32
    %34 = tpu.dynamic_rotate %9 by %c240_i32 dim 1 : vector<32x256xf32>, i32 -> vector<32x256xf32>
    %c7 = arith.constant 7 : index
    %c0_17 = arith.constant 0 : index
    %35 = vector.load %arg2[%c7, %c0_17] : memref<9x256xf32, #tpu.memory_space<vmem>>, vector<1x256xf32>
    %36 = vector.broadcast %35 : vector<1x256xf32> to vector<32x256xf32>
    %37 = arith.mulf %34, %36 : vector<32x256xf32>
    %c239_i32 = arith.constant 239 : i32
    %38 = tpu.dynamic_rotate %9 by %c239_i32 dim 1 : vector<32x256xf32>, i32 -> vector<32x256xf32>
    %c8 = arith.constant 8 : index
    %c0_18 = arith.constant 0 : index
    %39 = vector.load %arg2[%c8, %c0_18] : memref<9x256xf32, #tpu.memory_space<vmem>>, vector<1x256xf32>
    %40 = vector.broadcast %39 : vector<1x256xf32> to vector<32x256xf32>
    %41 = arith.mulf %38, %40 : vector<32x256xf32>
    %42 = tpu.concatenate %13, %17, %21, %25, %9, %29, %33, %37, %41 in 0 : vector<32x256xf32>, vector<32x256xf32>, vector<32x256xf32>, vector<32x256xf32>, vector<32x256xf32>, vector<32x256xf32>, vector<32x256xf32>, vector<32x256xf32>, vector<32x256xf32> -> vector<288x256xf32>
    %cst = arith.constant dense<0.000000e+00> : vector<64x256xf32>
    %43 = tpu.matmul %0, %42, %cst {dimension_numbers = #tpu.dot_dimension_numbers<[1], [0], [0], [1], [0, 0, 1, 1], [], []>} : vector<64x288xf32>, vector<288x256xf32>, vector<64x256xf32> -> vector<64x256xf32>
    %44 = vector.broadcast %1 : vector<64x1xf32> to vector<64x256xf32>
    %45 = arith.addf %43, %44 : vector<64x256xf32>
    %46 = vector.extract_strided_slice %45 {offsets = [0, 0], sizes = [32, 256], strides = [1, 1]} : vector<64x256xf32> to vector<32x256xf32>
    %cst_19 = arith.constant 5.000000e-01 : f32
    %47 = vector.broadcast %cst_19 : f32 to vector<32x256xf32>
    %48 = arith.mulf %47, %46 : vector<32x256xf32>
    %49 = math.tanh %48 : vector<32x256xf32>
    %cst_20 = arith.constant 5.000000e-01 : f32
    %50 = vector.broadcast %cst_20 : f32 to vector<32x256xf32>
    %51 = arith.mulf %50, %49 : vector<32x256xf32>
    %cst_21 = arith.constant 5.000000e-01 : f32
    %52 = vector.broadcast %cst_21 : f32 to vector<32x256xf32>
    %53 = arith.addf %51, %52 : vector<32x256xf32>
    %54 = arith.mulf %9, %53 : vector<32x256xf32>
    %55 = vector.extract_strided_slice %45 {offsets = [32, 0], sizes = [32, 256], strides = [1, 1]} : vector<64x256xf32> to vector<32x256xf32>
    %56 = math.tanh %55 : vector<32x256xf32>
    %57 = arith.mulf %9, %56 : vector<32x256xf32>
    %cst_22 = arith.constant dense<0.000000e+00> : vector<24x256xf32>
    %58 = tpu.matmul %4, %54, %cst_22 {dimension_numbers = #tpu.dot_dimension_numbers<[1], [0], [0], [1], [0, 0, 1, 1], [], []>} : vector<24x32xf32>, vector<32x256xf32>, vector<24x256xf32> -> vector<24x256xf32>
    %cst_23 = arith.constant dense<0.000000e+00> : vector<48x256xf32>
    %59 = tpu.matmul %5, %57, %cst_23 {dimension_numbers = #tpu.dot_dimension_numbers<[1], [0], [0], [1], [0, 0, 1, 1], [], []>} : vector<48x32xf32>, vector<32x256xf32>, vector<48x256xf32> -> vector<48x256xf32>
    %60 = vector.broadcast %6 : vector<24x1xf32> to vector<24x256xf32>
    %61 = arith.addf %58, %60 : vector<24x256xf32>
    %c0_24 = arith.constant 0 : index
    %c0_25 = arith.constant 0 : index
    %c0_26 = arith.constant 0 : index
    %62 = vector.load %arg7[%c0_24, %c0_25, %c0_26] : memref<2x72x256xf32, #tpu.memory_space<vmem>>, vector<1x24x256xf32>
    %63 = vector.shape_cast %62 : vector<1x24x256xf32> to vector<24x256xf32>
    %64 = vector.shape_cast %61 : vector<24x256xf32> to vector<1x24x256xf32>
    tpu.vector_store %arg7[%c0_24, %c0_25, %c0_26], %64 {strides = array<i32>} : memref<2x72x256xf32, #tpu.memory_space<vmem>>, vector<1x24x256xf32>,
    %65 = vector.broadcast %7 : vector<48x1xf32> to vector<48x256xf32>
    %66 = arith.addf %59, %65 : vector<48x256xf32>
    %c0_27 = arith.constant 0 : index
    %c24 = arith.constant 24 : index
    %c0_28 = arith.constant 0 : index
    %67 = vector.load %arg7[%c0_27, %c24, %c0_28] : memref<2x72x256xf32, #tpu.memory_space<vmem>>, vector<1x48x256xf32>
    %68 = vector.shape_cast %67 : vector<1x48x256xf32> to vector<48x256xf32>
    %69 = vector.shape_cast %66 : vector<48x256xf32> to vector<1x48x256xf32>
    tpu.vector_store %arg7[%c0_27, %c24, %c0_28], %69 {strides = array<i32>} : memref<2x72x256xf32, #tpu.memory_space<vmem>>, vector<1x48x256xf32>,
    %c1_29 = arith.constant 1 : index
    %c0_30 = arith.constant 0 : index
    %c0_31 = arith.constant 0 : index
    %70 = vector.load %arg1[%c1_29, %c0_30, %c0_31] : memref<2x32x256xf32, #tpu.memory_space<vmem>>, vector<1x32x256xf32>
    %71 = vector.shape_cast %70 : vector<1x32x256xf32> to vector<32x256xf32>
    %c17_i32_32 = arith.constant 17 : i32
    %72 = tpu.dynamic_rotate %71 by %c17_i32_32 dim 1 : vector<32x256xf32>, i32 -> vector<32x256xf32>
    %c0_33 = arith.constant 0 : index
    %c0_34 = arith.constant 0 : index
    %73 = vector.load %arg2[%c0_33, %c0_34] : memref<9x256xf32, #tpu.memory_space<vmem>>, vector<1x256xf32>
    %74 = vector.broadcast %73 : vector<1x256xf32> to vector<32x256xf32>
    %75 = arith.mulf %72, %74 : vector<32x256xf32>
    %c16_i32_35 = arith.constant 16 : i32
    %76 = tpu.dynamic_rotate %71 by %c16_i32_35 dim 1 : vector<32x256xf32>, i32 -> vector<32x256xf32>
    %c1_36 = arith.constant 1 : index
    %c0_37 = arith.constant 0 : index
    %77 = vector.load %arg2[%c1_36, %c0_37] : memref<9x256xf32, #tpu.memory_space<vmem>>, vector<1x256xf32>
    %78 = vector.broadcast %77 : vector<1x256xf32> to vector<32x256xf32>
    %79 = arith.mulf %76, %78 : vector<32x256xf32>
    %c15_i32_38 = arith.constant 15 : i32
    %80 = tpu.dynamic_rotate %71 by %c15_i32_38 dim 1 : vector<32x256xf32>, i32 -> vector<32x256xf32>
    %c2_39 = arith.constant 2 : index
    %c0_40 = arith.constant 0 : index
    %81 = vector.load %arg2[%c2_39, %c0_40] : memref<9x256xf32, #tpu.memory_space<vmem>>, vector<1x256xf32>
    %82 = vector.broadcast %81 : vector<1x256xf32> to vector<32x256xf32>
    %83 = arith.mulf %80, %82 : vector<32x256xf32>
    %c1_i32_41 = arith.constant 1 : i32
    %84 = tpu.dynamic_rotate %71 by %c1_i32_41 dim 1 : vector<32x256xf32>, i32 -> vector<32x256xf32>
    %c3_42 = arith.constant 3 : index
    %c0_43 = arith.constant 0 : index
    %85 = vector.load %arg2[%c3_42, %c0_43] : memref<9x256xf32, #tpu.memory_space<vmem>>, vector<1x256xf32>
    %86 = vector.broadcast %85 : vector<1x256xf32> to vector<32x256xf32>
    %87 = arith.mulf %84, %86 : vector<32x256xf32>
    %c255_i32_44 = arith.constant 255 : i32
    %88 = tpu.dynamic_rotate %71 by %c255_i32_44 dim 1 : vector<32x256xf32>, i32 -> vector<32x256xf32>
    %c5_45 = arith.constant 5 : index
    %c0_46 = arith.constant 0 : index
    %89 = vector.load %arg2[%c5_45, %c0_46] : memref<9x256xf32, #tpu.memory_space<vmem>>, vector<1x256xf32>
    %90 = vector.broadcast %89 : vector<1x256xf32> to vector<32x256xf32>
    %91 = arith.mulf %88, %90 : vector<32x256xf32>
    %c241_i32_47 = arith.constant 241 : i32
    %92 = tpu.dynamic_rotate %71 by %c241_i32_47 dim 1 : vector<32x256xf32>, i32 -> vector<32x256xf32>
    %c6_48 = arith.constant 6 : index
    %c0_49 = arith.constant 0 : index
    %93 = vector.load %arg2[%c6_48, %c0_49] : memref<9x256xf32, #tpu.memory_space<vmem>>, vector<1x256xf32>
    %94 = vector.broadcast %93 : vector<1x256xf32> to vector<32x256xf32>
    %95 = arith.mulf %92, %94 : vector<32x256xf32>
    %c240_i32_50 = arith.constant 240 : i32
    %96 = tpu.dynamic_rotate %71 by %c240_i32_50 dim 1 : vector<32x256xf32>, i32 -> vector<32x256xf32>
    %c7_51 = arith.constant 7 : index
    %c0_52 = arith.constant 0 : index
    %97 = vector.load %arg2[%c7_51, %c0_52] : memref<9x256xf32, #tpu.memory_space<vmem>>, vector<1x256xf32>
    %98 = vector.broadcast %97 : vector<1x256xf32> to vector<32x256xf32>
    %99 = arith.mulf %96, %98 : vector<32x256xf32>
    %c239_i32_53 = arith.constant 239 : i32
    %100 = tpu.dynamic_rotate %71 by %c239_i32_53 dim 1 : vector<32x256xf32>, i32 -> vector<32x256xf32>
    %c8_54 = arith.constant 8 : index
    %c0_55 = arith.constant 0 : index
    %101 = vector.load %arg2[%c8_54, %c0_55] : memref<9x256xf32, #tpu.memory_space<vmem>>, vector<1x256xf32>
    %102 = vector.broadcast %101 : vector<1x256xf32> to vector<32x256xf32>
    %103 = arith.mulf %100, %102 : vector<32x256xf32>
    %104 = tpu.concatenate %75, %79, %83, %87, %71, %91, %95, %99, %103 in 0 : vector<32x256xf32>, vector<32x256xf32>, vector<32x256xf32>, vector<32x256xf32>, vector<32x256xf32>, vector<32x256xf32>, vector<32x256xf32>, vector<32x256xf32>, vector<32x256xf32> -> vector<288x256xf32>
    %cst_56 = arith.constant dense<0.000000e+00> : vector<64x256xf32>
    %105 = tpu.matmul %0, %104, %cst_56 {dimension_numbers = #tpu.dot_dimension_numbers<[1], [0], [0], [1], [0, 0, 1, 1], [], []>} : vector<64x288xf32>, vector<288x256xf32>, vector<64x256xf32> -> vector<64x256xf32>
    %106 = vector.broadcast %1 : vector<64x1xf32> to vector<64x256xf32>
    %107 = arith.addf %105, %106 : vector<64x256xf32>
    %108 = vector.extract_strided_slice %107 {offsets = [0, 0], sizes = [32, 256], strides = [1, 1]} : vector<64x256xf32> to vector<32x256xf32>
    %cst_57 = arith.constant 5.000000e-01 : f32
    %109 = vector.broadcast %cst_57 : f32 to vector<32x256xf32>
    %110 = arith.mulf %109, %108 : vector<32x256xf32>
    %111 = math.tanh %110 : vector<32x256xf32>
    %cst_58 = arith.constant 5.000000e-01 : f32
    %112 = vector.broadcast %cst_58 : f32 to vector<32x256xf32>
    %113 = arith.mulf %112, %111 : vector<32x256xf32>
    %cst_59 = arith.constant 5.000000e-01 : f32
    %114 = vector.broadcast %cst_59 : f32 to vector<32x256xf32>
    %115 = arith.addf %113, %114 : vector<32x256xf32>
    %116 = arith.mulf %71, %115 : vector<32x256xf32>
    %117 = vector.extract_strided_slice %107 {offsets = [32, 0], sizes = [32, 256], strides = [1, 1]} : vector<64x256xf32> to vector<32x256xf32>
    %118 = math.tanh %117 : vector<32x256xf32>
    %119 = arith.mulf %71, %118 : vector<32x256xf32>
    %cst_60 = arith.constant dense<0.000000e+00> : vector<24x256xf32>
    %120 = tpu.matmul %4, %116, %cst_60 {dimension_numbers = #tpu.dot_dimension_numbers<[1], [0], [0], [1], [0, 0, 1, 1], [], []>} : vector<24x32xf32>, vector<32x256xf32>, vector<24x256xf32> -> vector<24x256xf32>
    %cst_61 = arith.constant dense<0.000000e+00> : vector<48x256xf32>
    %121 = tpu.matmul %5, %119, %cst_61 {dimension_numbers = #tpu.dot_dimension_numbers<[1], [0], [0], [1], [0, 0, 1, 1], [], []>} : vector<48x32xf32>, vector<32x256xf32>, vector<48x256xf32> -> vector<48x256xf32>
    %122 = vector.broadcast %6 : vector<24x1xf32> to vector<24x256xf32>
    %123 = arith.addf %120, %122 : vector<24x256xf32>
    %c1_62 = arith.constant 1 : index
    %c0_63 = arith.constant 0 : index
    %c0_64 = arith.constant 0 : index
    %124 = vector.load %arg7[%c1_62, %c0_63, %c0_64] : memref<2x72x256xf32, #tpu.memory_space<vmem>>, vector<1x24x256xf32>
    %125 = vector.shape_cast %124 : vector<1x24x256xf32> to vector<24x256xf32>
    %126 = vector.shape_cast %123 : vector<24x256xf32> to vector<1x24x256xf32>
    tpu.vector_store %arg7[%c1_62, %c0_63, %c0_64], %126 {strides = array<i32>} : memref<2x72x256xf32, #tpu.memory_space<vmem>>, vector<1x24x256xf32>,
    %127 = vector.broadcast %7 : vector<48x1xf32> to vector<48x256xf32>
    %128 = arith.addf %121, %127 : vector<48x256xf32>
    %c1_65 = arith.constant 1 : index
    %c24_66 = arith.constant 24 : index
    %c0_67 = arith.constant 0 : index
    %129 = vector.load %arg7[%c1_65, %c24_66, %c0_67] : memref<2x72x256xf32, #tpu.memory_space<vmem>>, vector<1x48x256xf32>
    %130 = vector.shape_cast %129 : vector<1x48x256xf32> to vector<48x256xf32>
    %131 = vector.shape_cast %128 : vector<48x256xf32> to vector<1x48x256xf32>
    tpu.vector_store %arg7[%c1_65, %c24_66, %c0_67], %131 {strides = array<i32>} : memref<2x72x256xf32, #tpu.memory_space<vmem>>, vector<1x48x256xf32>,
    return
  }
  func.func @transform_0(%arg0: i32) -> (i32, i32, i32) {
    %c0_i32 = arith.constant 0 : i32
    %c0_i32_0 = arith.constant 0 : i32
    %c0_i32_1 = arith.constant 0 : i32
    return %arg0, %c0_i32, %c0_i32_0 : i32, i32, i32
  }
  func.func @transform_1(%arg0: i32) -> (i32, i32) {
    %c0_i32 = arith.constant 0 : i32
    %c0_i32_0 = arith.constant 0 : i32
    %c0_i32_1 = arith.constant 0 : i32
    return %c0_i32, %c0_i32_0 : i32, i32
  }
  func.func @transform_2(%arg0: i32) -> (i32, i32) {
    %c0_i32 = arith.constant 0 : i32
    %c0_i32_0 = arith.constant 0 : i32
    %c0_i32_1 = arith.constant 0 : i32
    return %c0_i32, %c0_i32_0 : i32, i32
  }
  func.func @transform_3(%arg0: i32) -> (i32, i32) {
    %c0_i32 = arith.constant 0 : i32
    %c0_i32_0 = arith.constant 0 : i32
    %c0_i32_1 = arith.constant 0 : i32
    return %c0_i32, %c0_i32_0 : i32, i32
  }
  func.func @transform_4(%arg0: i32) -> (i32, i32) {
    %c0_i32 = arith.constant 0 : i32
    %c0_i32_0 = arith.constant 0 : i32
    %c0_i32_1 = arith.constant 0 : i32
    return %c0_i32, %c0_i32_0 : i32, i32
  }
  func.func @transform_5(%arg0: i32) -> (i32, i32) {
    %c0_i32 = arith.constant 0 : i32
    %c0_i32_0 = arith.constant 0 : i32
    %c0_i32_1 = arith.constant 0 : i32
    return %c0_i32, %c0_i32_0 : i32, i32
  }
  func.func @transform_6(%arg0: i32) -> (i32, i32, i32) {
    %c0_i32 = arith.constant 0 : i32
    %c0_i32_0 = arith.constant 0 : i32
    %c0_i32_1 = arith.constant 0 : i32
    return %arg0, %c0_i32, %c0_i32_0 : i32, i32, i32
  }
}

</mosaic_0001>

<bundles_post_ra>
// kernel: forward.1
= control target key start
LH: loop header
LB: loop body
LE: loop exit
PB: predicated region body
PF: predicated region fallthrough
CT: control target
= control target key end

     0   :  { %s2479_s21 = smov 0   ;;  %s3895_s0 = inlined_call_operand.vmem [shape: f32[4,32,256], index: 0, kind: input, shape index: {}]   ;;  %s3896_s1 = inlined_call_operand.vmem [shape: f32[9,256], index: 1, kind: input, shape index: {}]   ;;  %s3897_s2 = inlined_call_operand.vmem [shape: f32[64,288], index: 2, kind: input, shape index: {}]   ;;  %s3898_s3 = inlined_call_operand.vmem [shape: f32[64,1], index: 3, kind: input, shape index: {}]   ;;  %s3899_s4 = inlined_call_operand.vmem [shape: f32[72,32], index: 4, kind: input, shape index: {}]   ;;  %s3900_s5 = inlined_call_operand.vmem [shape: f32[72,1], index: 5, kind: input, shape index: {}]   ;;  %s3901_s6 = inlined_call_operand.vmem [shape: f32[4,72,256], index: 6, kind: output, shape index: {}]  }
   0x1 LB: > { %s2212_s22 = sadd.s32 4294967295, %s2432_s21   ;;  %p2216_p0 = scmp.ge.s32.totalorder %s2432_s21, 1  ;;  %s2432_s21 = sphi %s2479_s21, %s16_s21  }
   0x2   : > { %p214_p1 = scmp.lt.s32.totalorder %s2432_s21, 3 }
   0x4   : > { %p215_p2 = pnand %p2216_p0, %p214_p1 }
   0x6   : > { %218 = sbr.rel (%p215_p2) target bundleno = 1053 (0x41d), region = 44 }
   0xb   : > { %s2217_s23 = sshll.u32 %s2212_s22, 1  ;;  %s2434_s28 = smov 1   ;;  %v2435_v6 = vmov 0   ;;  %v334_v9 = vlaneseq  ;;  %v261_v10 = vld [vmem:[%s3897_s2 + $0x8] sm:$0xff]  ;;  %v3902_v20 = vmov 0.0   ;;  %v286_v38 = vld [vmem:[%s3898_s3 + $0x10] sm:$0xff] }
   0xc   : > { %p247_p3 = scmp.lt.s32.totalorder %s2217_s23, 3  ;;  %2327 = vset.pattern.permute.xlu1 %v2435_v6  ;;  %2326 = vset.pattern.permute.xlu0 %v2435_v6  ;;  %s2436_s29 = smov 15   ;;  %v2224_v15 = vld [vmem:[%s3896_s1 + $0x3] ss:$8 sm:$0x3]  ;;  %v287_v41 = vld [vmem:[%s3898_s3 + $0x18] sm:$0xff] }
   0xd   : > { %s2437_s30 = smov 16   ;;  %s2438_s7 = smov 17   ;;  %v348_v11 = vshrl.u32 %v334_v9, 7  ;;  %816 = vmatprep.mubr.f32.mxu0 %v261_v10  ;;  %v2638_v12 = vand.u32 127, %v334_v9  ;;  %929 = vmatprep.mubr.f32.mxu1 %v3902_v20  ;;  %v285_v48 = vld [vmem:[%s3898_s3 + $0x8] sm:$0xff]  ;;  %v284_v51 = vld [vmem:[%s3898_s3] sm:$0xff] }
   0xe   : > { %s4028_s23 = smov (!%p247_p3, %s2217_s23), 3  ;;  %s2439_s8 = smov 112   ;;  %v2223_v37 = vld [vmem:[%s3896_s1 + $0x2] ss:$8 sm:$0x3]  ;;  %v291_v56 = vld [vmem:[%s3898_s3 + $0x38] sm:$0xff] }
   0xf   : > { %s2298_s24 = sshll.u32 %s4028_s23, 6  ;;  %s2440_s9 = smov 113   ;;  %v2640_v13 = vsub.s32 0, %v348_v11  ;;  %v2642_v14 = vsub.s32 1, %v348_v11  ;;  %vm473_vm0 = vcmp.lt.s32.totalorder %v2638_v12, 1  ;;  %vm427_vm1 = vcmp.lt.s32.totalorder %v2638_v12, 15 }
  0x10   : > { %s2493_s27 = scalar_lea.vmem %s3895_s0, %s2298_s24  ;;  %s2441_s10 = smov 127   ;;  %v290_v59 = vld [vmem:[%s3898_s3 + $0x30] sm:$0xff]  ;;  %v289_v6 = vld [vmem:[%s3898_s3 + $0x28] sm:$0xff]  ;;  %v288_v11 = vld [vmem:[%s3898_s3 + $0x20] sm:$0xff]  ;;  %vm381_vm2 = vcmp.lt.s32.totalorder %v2638_v12, 16  ;;  %vm336_vm3 = vcmp.lt.s32.totalorder %v2638_v12, 17 }
  0x11   : > { %v2496_v0 = vld [vmem:[%s2493_s27 + $0x30] sm:$0xff]  ;;  %v2499_v1 = vld [vmem:[%s2493_s27 + $0x20] sm:$0xff]  ;;  %v2506_v2 = vld [vmem:[%s2493_s27 + $0x38] sm:$0xff]  ;;  %s2442_s13 = smov 111   ;;  %v492_v18 = vrot.slane %v2224_v15, %v2642_v14  ;;  %v488_v19 = vrot.slane %v2224_v15, %v2640_v13  ;;  %v446_v46 = vrot.slane %v2223_v37, %v2642_v14  ;;  %v442_v47 = vrot.slane %v2223_v37, %v2640_v13  ;;  %s2307_s25 = smul.u32 144, %s4028_s23 }
  0x12   : > { %463 = vrot.lane.b32.xlu0 %v2496_v0, %s2434_s28  ;;  %461 = vrot.lane.b32.xlu1 %v2499_v1, %s2434_s28  ;;  %v2509_v3 = vld [vmem:[%s2493_s27 + $0x28] sm:$0xff]  ;;  %v2516_v4 = vld [vmem:[%s2493_s27 + $0x18] sm:$0xff]  ;;  %vm611_vm4 = vcmp.lt.s32.totalorder %v2638_v12, 112  ;;  %vm565_vm5 = vcmp.lt.s32.totalorder %v2638_v12, 113  ;;  %vm519_vm6 = vcmp.lt.s32.totalorder %v2638_v12, 127  ;;  %vm657_vm7 = vcmp.lt.s32.totalorder %v2638_v12, 111 }
  0x13   : > { %v2519_v5 = vld [vmem:[%s2493_s27 + $0x10] sm:$0xff]  ;;  %v2526_v7 = vld [vmem:[%s2493_s27 + $0x8] sm:$0xff]  ;;  %v2529_v8 = vld [vmem:[%s2493_s27] sm:$0xff]  ;;  %vm727_vm8 = vcmask 261120  }
  0x16   : > { %471 = vrot.lane.b32.xlu0 %v2506_v2, %s2434_s28  ;;  %469 = vrot.lane.b32.xlu1 %v2509_v3, %s2434_s28 }
  0x1a   : > { %467 = vrot.lane.b32.xlu1 %v2516_v4, %s2434_s28  ;;  %459 = vrot.lane.b32.xlu0 %v2519_v5, %s2434_s28 }
  0x1e   : > { %465 = vrot.lane.b32.xlu1 %v2526_v7, %s2434_s28  ;;  %457 = vrot.lane.b32.xlu0 %v2529_v8, %s2434_s28 }
  0x22   : > { %425 = vrot.lane.b32.xlu1 %v2506_v2, %s2436_s29  ;;  %417 = vrot.lane.b32.xlu0 %v2496_v0, %s2436_s29 }
  0x26   : > { %423 = vrot.lane.b32.xlu1 %v2509_v3, %s2436_s29  ;;  %415 = vrot.lane.b32.xlu0 %v2499_v1, %s2436_s29 }
  0x2a   : > { %421 = vrot.lane.b32.xlu1 %v2516_v4, %s2436_s29  ;;  %413 = vrot.lane.b32.xlu0 %v2519_v5, %s2436_s29 }
  0x2e   : > { %419 = vrot.lane.b32.xlu1 %v2526_v7, %s2436_s29  ;;  %411 = vrot.lane.b32.xlu0 %v2529_v8, %s2436_s29 }
  0x32   : > { %379 = vrot.lane.b32.xlu1 %v2506_v2, %s2437_s30  ;;  %371 = vrot.lane.b32.xlu0 %v2496_v0, %s2437_s30 }
  0x36   : > { %377 = vrot.lane.b32.xlu1 %v2509_v3, %s2437_s30  ;;  %369 = vrot.lane.b32.xlu0 %v2499_v1, %s2437_s30 }
  0x3a   : > { %375 = vrot.lane.b32.xlu1 %v2516_v4, %s2437_s30  ;;  %367 = vrot.lane.b32.xlu0 %v2519_v5, %s2437_s30 }
  0x3e   : > { %373 = vrot.lane.b32.xlu1 %v2526_v7, %s2437_s30  ;;  %365 = vrot.lane.b32.xlu0 %v2529_v8, %s2437_s30 }
  0x42   : > { %332 = vrot.lane.b32.xlu1 %v2506_v2, %s2438_s7  ;;  %324 = vrot.lane.b32.xlu0 %v2496_v0, %s2438_s7 }
  0x46   : > { %330 = vrot.lane.b32.xlu1 %v2509_v3, %s2438_s7  ;;  %322 = vrot.lane.b32.xlu0 %v2499_v1, %s2438_s7 }
  0x4a   : > { %328 = vrot.lane.b32.xlu1 %v2516_v4, %s2438_s7  ;;  %320 = vrot.lane.b32.xlu0 %v2519_v5, %s2438_s7 }
  0x4e   : > { %326 = vrot.lane.b32.xlu1 %v2526_v7, %s2438_s7  ;;  %318 = vrot.lane.b32.xlu0 %v2529_v8, %s2438_s7 }
  0x52   : > { %609 = vrot.lane.b32.xlu1 %v2506_v2, %s2439_s8  ;;  %601 = vrot.lane.b32.xlu0 %v2496_v0, %s2439_s8 }
  0x56   : > { %607 = vrot.lane.b32.xlu1 %v2509_v3, %s2439_s8  ;;  %599 = vrot.lane.b32.xlu0 %v2499_v1, %s2439_s8 }
  0x5a   : > { %605 = vrot.lane.b32.xlu1 %v2516_v4, %s2439_s8  ;;  %597 = vrot.lane.b32.xlu0 %v2519_v5, %s2439_s8 }
  0x5e   : > { %603 = vrot.lane.b32.xlu1 %v2526_v7, %s2439_s8  ;;  %595 = vrot.lane.b32.xlu0 %v2529_v8, %s2439_s8 }
  0x62   : > { %563 = vrot.lane.b32.xlu1 %v2506_v2, %s2440_s9  ;;  %555 = vrot.lane.b32.xlu0 %v2496_v0, %s2440_s9 }
  0x66   : > { %561 = vrot.lane.b32.xlu1 %v2509_v3, %s2440_s9  ;;  %553 = vrot.lane.b32.xlu0 %v2499_v1, %s2440_s9 }
  0x6a   : > { %559 = vrot.lane.b32.xlu1 %v2516_v4, %s2440_s9  ;;  %551 = vrot.lane.b32.xlu0 %v2519_v5, %s2440_s9 }
  0x6e   : > { %557 = vrot.lane.b32.xlu1 %v2526_v7, %s2440_s9  ;;  %549 = vrot.lane.b32.xlu0 %v2529_v8, %s2440_s9 }
  0x72   : > { %517 = vrot.lane.b32.xlu1 %v2506_v2, %s2441_s10  ;;  %509 = vrot.lane.b32.xlu0 %v2496_v0, %s2441_s10 }
  0x76   : > { %515 = vrot.lane.b32.xlu1 %v2509_v3, %s2441_s10  ;;  %507 = vrot.lane.b32.xlu0 %v2499_v1, %s2441_s10 }
  0x7a   : > { %513 = vrot.lane.b32.xlu1 %v2516_v4, %s2441_s10  ;;  %505 = vrot.lane.b32.xlu0 %v2519_v5, %s2441_s10 }
  0x7e   : > { %511 = vrot.lane.b32.xlu1 %v2526_v7, %s2441_s10  ;;  %503 = vrot.lane.b32.xlu0 %v2529_v8, %s2441_s10 }
  0x82   : > { %655 = vrot.lane.b32.xlu1 %v2506_v2, %s2442_s13  ;;  %647 = vrot.lane.b32.xlu0 %v2496_v0, %s2442_s13 }
  0x84   : > { %v464_v16 = vpop.permute.xlu0 %463  ;;  %v462_v17 = vpop.permute.xlu1 %461 }
  0x86   : > { %653 = vrot.lane.b32.xlu1 %v2509_v3, %s2442_s13  ;;  %645 = vrot.lane.b32.xlu0 %v2499_v1, %s2442_s13 }
  0x88   : > { %v472_v21 = vpop.permute.xlu0 %471  ;;  %v470_v22 = vpop.permute.xlu1 %469 }
  0x89   : > { %v476_v23 = vsel %vm473_vm0, %v462_v17, %v470_v22  ;;  %v477_v24 = vsel %vm473_vm0, %v464_v16, %v472_v21  ;;  %v481_v25 = vsel %vm473_vm0, %v472_v21, %v464_v16  ;;  %v480_v26 = vsel %vm473_vm0, %v470_v22, %v462_v17  ;;  %v2725_v21 = vld [vmem:[%s2493_s27 + $0x70] sm:$0xff] }
  0x8a   : > { %651 = vrot.lane.b32.xlu1 %v2516_v4, %s2442_s13  ;;  %643 = vrot.lane.b32.xlu0 %v2519_v5, %s2442_s13  ;;  %v502_v27 = vmul.f32 %v492_v18, %v477_v24  ;;  %v501_v28 = vmul.f32 %v488_v19, %v481_v25  ;;  %v500_v31 = vmul.f32 %v492_v18, %v476_v23  ;;  %v2728_v24 = vld [vmem:[%s2493_s27 + $0x78] sm:$0xff] }
  0x8b   : > { %v499_v34 = vmul.f32 %v488_v19, %v480_v26 }
  0x8c   : > { %752 = vmatprep.subr.mxu0 %v502_v27  ;;  %v468_v29 = vpop.permute.xlu1 %467  ;;  %v460_v30 = vpop.permute.xlu0 %459 }
  0x8d   : > { %v475_v32 = vsel %vm473_vm0, %v460_v30, %v468_v29  ;;  %v479_v33 = vsel %vm473_vm0, %v468_v29, %v460_v30  ;;  %753 = vmatpush1.msra.mxu0 %v501_v28 }
  0x8e   : > { %754 = vmatprep.subr.mxu0 %v500_v31  ;;  %649 = vrot.lane.b32.xlu1 %v2526_v7, %s2442_s13  ;;  %v498_v35 = vmul.f32 %v492_v18, %v475_v32  ;;  %v497_v36 = vmul.f32 %v488_v19, %v479_v33  ;;  %v2740_v31 = vld [vmem:[%s2493_s27 + $0x60] sm:$0xff] }
  0x8f   : > { %641 = vrot.lane.b32.xlu0 %v2529_v8, %s2442_s13  ;;  %755 = vmatpush1.msra.mxu0 %v499_v34  ;;  %v2745_v34 = vld [vmem:[%s2493_s27 + $0x68] sm:$0xff] }
  0x90   : > { %756 = vmatprep.subr.mxu0 %v498_v35  ;;  %v466_v39 = vpop.permute.xlu1 %465  ;;  %v458_v40 = vpop.permute.xlu0 %457 }
  0x91   : > { %v474_v42 = vsel %vm473_vm0, %v458_v40, %v466_v39  ;;  %v478_v43 = vsel %vm473_vm0, %v466_v39, %v458_v40  ;;  %757 = vmatpush1.msra.mxu0 %v497_v36  ;;  %v2754_v39 = vld [vmem:[%s2493_s27 + $0x50] sm:$0xff] }
  0x92   : > { %v496_v44 = vmul.f32 %v492_v18, %v474_v42  ;;  %v495_v45 = vmul.f32 %v488_v19, %v478_v43  ;;  %699 = vperm.xlu1 %2327, %v286_v38   ;;  %v2222_v19 = vld [vmem:[%s3896_s1 + $0x1] ss:$8 sm:$0x3]  ;;  %v2759_v42 = vld [vmem:[%s2493_s27 + $0x58] sm:$0xff] }
  0x93   : > { %704 = vperm.xlu0 %2326, %v287_v41   ;;  %v400_v29 = vrot.slane %v2222_v19, %v2642_v14  ;;  %v396_v30 = vrot.slane %v2222_v19, %v2640_v13 }
  0x94   : > { %v426_v49 = vpop.permute.xlu1 %425  ;;  %758 = vmatprep.subr.mxu0 %v496_v44  ;;  %v418_v50 = vpop.permute.xlu0 %417 }
  0x95   : > { %v431_v52 = vsel %vm427_vm1, %v418_v50, %v426_v49  ;;  %v435_v53 = vsel %vm427_vm1, %v426_v49, %v418_v50  ;;  %759 = vmatpush1.msra.mxu0 %v495_v45  ;;  %v2773_v50 = vld [vmem:[%s2493_s27 + $0x48] sm:$0xff] }
  0x96   : > { %v456_v54 = vmul.f32 %v446_v46, %v431_v52  ;;  %v455_v55 = vmul.f32 %v442_v47, %v435_v53  ;;  %694 = vperm.xlu1 %2327, %v285_v48  }
  0x97   : > { %689 = vperm.xlu0 %2326, %v284_v51  }
  0x98   : > { %v424_v57 = vpop.permute.xlu1 %423  ;;  %760 = vmatprep.subr.mxu0 %v456_v54  ;;  %v416_v58 = vpop.permute.xlu0 %415 }
  0x99   : > { %v430_v60 = vsel %vm427_vm1, %v416_v58, %v424_v57  ;;  %v434_v61 = vsel %vm427_vm1, %v424_v57, %v416_v58  ;;  %761 = vmatpush1.msra.mxu0 %v455_v55  ;;  %v345_v55 = vld [vmem:[%s3896_s1] ss:$8 sm:$0x3] }
  0x9a   : > { %v454_v62 = vmul.f32 %v446_v46, %v430_v60  ;;  %v453_v63 = vmul.f32 %v442_v47, %v434_v61  ;;  %724 = vperm.xlu1 %2327, %v291_v56  }
  0x9b   : > { %719 = vperm.xlu0 %2326, %v290_v59  }
  0x9c   : > { %v422_v9 = vpop.permute.xlu1 %421  ;;  %762 = vmatprep.subr.mxu0 %v454_v62  ;;  %v414_v10 = vpop.permute.xlu0 %413  ;;  %v354_v62 = vrot.slane %v345_v55, %v2642_v14 }
  0x9d   : > { %v429_v15 = vsel %vm427_vm1, %v414_v10, %v422_v9  ;;  %v433_v16 = vsel %vm427_vm1, %v422_v9, %v414_v10  ;;  %763 = vmatpush1.msra.mxu0 %v453_v63  ;;  %v350_v63 = vrot.slane %v345_v55, %v2640_v13 }
  0x9e   : > { %v452_v17 = vmul.f32 %v446_v46, %v429_v15  ;;  %v451_v18 = vmul.f32 %v442_v47, %v433_v16  ;;  %714 = vperm.xlu1 %2327, %v289_v6  }
  0x9f   : > { %709 = vperm.xlu0 %2326, %v288_v11  }
  0xa0   : > { %v420_v22 = vpop.permute.xlu1 %419  ;;  %764 = vmatprep.subr.mxu0 %v452_v17  ;;  %v412_v23 = vpop.permute.xlu0 %411 }
  0xa1   : > { %v428_v25 = vsel %vm427_vm1, %v412_v23, %v420_v22  ;;  %v432_v26 = vsel %vm427_vm1, %v420_v22, %v412_v23  ;;  %765 = vmatpush1.msra.mxu0 %v451_v18 }
  0xa2   : > { %v450_v27 = vmul.f32 %v446_v46, %v428_v25  ;;  %v449_v28 = vmul.f32 %v442_v47, %v432_v26  ;;  %1455 = vrot.lane.b32.xlu1 %v2725_v21, %s2434_s28  ;;  %v2768_v47 = vld [vmem:[%s2493_s27 + $0x40] sm:$0xff] }
  0xa3   : > { %1463 = vrot.lane.b32.xlu0 %v2728_v24, %s2434_s28 }
  0xa4   : > { %v380_v32 = vpop.permute.xlu1 %379  ;;  %766 = vmatprep.subr.mxu0 %v450_v27  ;;  %v372_v33 = vpop.permute.xlu0 %371 }
  0xa5   : > { %v385_v35 = vsel %vm381_vm2, %v372_v33, %v380_v32  ;;  %v389_v36 = vsel %vm381_vm2, %v380_v32, %v372_v33  ;;  %767 = vmatpush1.msra.mxu0 %v449_v28  ;;  %v2227_v33 = vld [vmem:[%s3896_s1 + $0x7] ss:$8 sm:$0x3] }
  0xa6   : > { %v410_v37 = vmul.f32 %v400_v29, %v385_v35  ;;  %v409_v38 = vmul.f32 %v396_v30, %v389_v36  ;;  %1453 = vrot.lane.b32.xlu1 %v2740_v31, %s2434_s28 }
  0xa7   : > { %1461 = vrot.lane.b32.xlu0 %v2745_v34, %s2434_s28 }
  0xa8   : > { %v378_v40 = vpop.permute.xlu1 %377  ;;  %768 = vmatprep.subr.mxu0 %v410_v37  ;;  %v370_v41 = vpop.permute.xlu0 %369 }
  0xa9   : > { %v384_v43 = vsel %vm381_vm2, %v370_v41, %v378_v40  ;;  %v388_v44 = vsel %vm381_vm2, %v378_v40, %v370_v41  ;;  %769 = vmatpush1.msra.mxu0 %v409_v38 }
  0xaa   : > { %v408_v45 = vmul.f32 %v400_v29, %v384_v43  ;;  %v407_v46 = vmul.f32 %v396_v30, %v388_v44  ;;  %1451 = vrot.lane.b32.xlu1 %v2754_v39, %s2434_s28  ;;  %v630_v43 = vrot.slane %v2227_v33, %v2642_v14  ;;  %v626_v44 = vrot.slane %v2227_v33, %v2640_v13 }
  0xab   : > { %1459 = vrot.lane.b32.xlu0 %v2759_v42, %s2434_s28 }
  0xac   : > { %v376_v48 = vpop.permute.xlu1 %375  ;;  %770 = vmatprep.subr.mxu0 %v408_v45  ;;  %v368_v49 = vpop.permute.xlu0 %367 }
  0xad   : > { %v383_v51 = vsel %vm381_vm2, %v368_v49, %v376_v48  ;;  %v387_v52 = vsel %vm381_vm2, %v376_v48, %v368_v49  ;;  %771 = vmatpush1.msra.mxu0 %v407_v46 }
  0xae   : > { %v406_v53 = vmul.f32 %v400_v29, %v383_v51  ;;  %v405_v54 = vmul.f32 %v396_v30, %v387_v52  ;;  %1449 = vrot.lane.b32.xlu1 %v2768_v47, %s2434_s28 }
  0xaf   : > { %1457 = vrot.lane.b32.xlu0 %v2773_v50, %s2434_s28  ;;  %s3742_s28 = scalar_lea.vmem %s3901_s6, %s2307_s25 }
  0xb0   : > { %v374_v56 = vpop.permute.xlu1 %373  ;;  %772 = vmatprep.subr.mxu0 %v406_v53  ;;  %v366_v57 = vpop.permute.xlu0 %365 }
  0xb1   : > { %v382_v58 = vsel %vm381_vm2, %v366_v57, %v374_v56  ;;  %v386_v59 = vsel %vm381_vm2, %v374_v56, %v366_v57  ;;  %773 = vmatpush1.msra.mxu0 %v405_v54 }
  0xb2   : > { %v404_v60 = vmul.f32 %v400_v29, %v382_v58  ;;  %v403_v61 = vmul.f32 %v396_v30, %v386_v59  ;;  %1411 = vrot.lane.b32.xlu1 %v2725_v21, %s2436_s29 }
  0xb3   : > { %1419 = vrot.lane.b32.xlu0 %v2728_v24, %s2436_s29 }
  0xb4   : > { %v333_v6 = vpop.permute.xlu1 %332  ;;  %774 = vmatprep.subr.mxu0 %v404_v60  ;;  %v325_v9 = vpop.permute.xlu0 %324 }
  0xb5   : > { %v340_v10 = vsel %vm336_vm3, %v325_v9, %v333_v6  ;;  %v344_v11 = vsel %vm336_vm3, %v333_v6, %v325_v9  ;;  %775 = vmatpush1.msra.mxu0 %v403_v61  ;;  %v2226_v9 = vld [vmem:[%s3896_s1 + $0x6] ss:$8 sm:$0x3] }
  0xb6   : > { %v364_v15 = vmul.f32 %v354_v62, %v340_v10  ;;  %v363_v16 = vmul.f32 %v350_v63, %v344_v11  ;;  %1409 = vrot.lane.b32.xlu1 %v2740_v31, %s2436_s29 }
  0xb7   : > { %1417 = vrot.lane.b32.xlu0 %v2745_v34, %s2436_s29 }
  0xb8   : > { %v331_v17 = vpop.permute.xlu1 %330  ;;  %776 = vmatprep.subr.mxu0 %v364_v15  ;;  %v323_v18 = vpop.permute.xlu0 %322 }
  0xb9   : > { %v339_v19 = vsel %vm336_vm3, %v323_v18, %v331_v17  ;;  %v343_v22 = vsel %vm336_vm3, %v331_v17, %v323_v18  ;;  %777 = vmatpush1.msra.mxu0 %v363_v16 }
  0xba   : > { %v362_v23 = vmul.f32 %v354_v62, %v339_v19  ;;  %v361_v25 = vmul.f32 %v350_v63, %v343_v22  ;;  %1407 = vrot.lane.b32.xlu1 %v2754_v39, %s2436_s29  ;;  %v584_v19 = vrot.slane %v2226_v9, %v2642_v14  ;;  %v580_v22 = vrot.slane %v2226_v9, %v2640_v13 }
  0xbb   : > { %1415 = vrot.lane.b32.xlu0 %v2759_v42, %s2436_s29 }
  0xbc   : > { %v329_v26 = vpop.permute.xlu1 %328  ;;  %778 = vmatprep.subr.mxu0 %v362_v23  ;;  %v321_v27 = vpop.permute.xlu0 %320 }
  0xbd   : > { %v338_v28 = vsel %vm336_vm3, %v321_v27, %v329_v26  ;;  %v342_v29 = vsel %vm336_vm3, %v329_v26, %v321_v27  ;;  %779 = vmatpush1.msra.mxu0 %v361_v25 }
  0xbe   : > { %v360_v30 = vmul.f32 %v354_v62, %v338_v28  ;;  %v359_v32 = vmul.f32 %v350_v63, %v342_v29  ;;  %1405 = vrot.lane.b32.xlu1 %v2768_v47, %s2436_s29 }
  0xbf   : > { %1413 = vrot.lane.b32.xlu0 %v2773_v50, %s2436_s29 }
  0xc0   : > { %v327_v35 = vpop.permute.xlu1 %326  ;;  %780 = vmatprep.subr.mxu0 %v360_v30  ;;  %v319_v36 = vpop.permute.xlu0 %318 }
  0xc1   : > { %v337_v37 = vsel %vm336_vm3, %v319_v36, %v327_v35  ;;  %v341_v38 = vsel %vm336_vm3, %v327_v35, %v319_v36  ;;  %781 = vmatpush1.msra.mxu0 %v359_v32 }
  0xc2   : > { %v358_v40 = vmul.f32 %v354_v62, %v337_v37  ;;  %v357_v41 = vmul.f32 %v350_v63, %v341_v38  ;;  %1367 = vrot.lane.b32.xlu1 %v2725_v21, %s2437_s30 }
  0xc3   : > { %1375 = vrot.lane.b32.xlu0 %v2728_v24, %s2437_s30 }
  0xc4   : > { %v610_v45 = vpop.permute.xlu1 %609  ;;  %782 = vmatprep.subr.mxu0 %v358_v40  ;;  %v602_v46 = vpop.permute.xlu0 %601 }
  0xc5   : > { %v615_v48 = vsel %vm611_vm4, %v602_v46, %v610_v45  ;;  %v619_v49 = vsel %vm611_vm4, %v610_v45, %v602_v46  ;;  %783 = vmatpush1.msra.mxu0 %v357_v41  ;;  %v2225_v46 = vld [vmem:[%s3896_s1 + $0x5] ss:$8 sm:$0x3] }
  0xc6   : > { %v640_v51 = vmul.f32 %v630_v43, %v619_v49  ;;  %v639_v52 = vmul.f32 %v626_v44, %v615_v48  ;;  %1365 = vrot.lane.b32.xlu1 %v2740_v31, %s2437_s30 }
  0xc7   : > { %1373 = vrot.lane.b32.xlu0 %v2745_v34, %s2437_s30 }
  0xc8   : > { %v608_v53 = vpop.permute.xlu1 %607  ;;  %784 = vmatprep.subr.mxu0 %v640_v51  ;;  %v600_v54 = vpop.permute.xlu0 %599 }
  0xc9   : > { %v614_v55 = vsel %vm611_vm4, %v600_v54, %v608_v53  ;;  %v618_v56 = vsel %vm611_vm4, %v608_v53, %v600_v54  ;;  %785 = vmatpush2.msra.mxu0 %v639_v52 }
  0xca   : > { %v638_v57 = vmul.f32 %v630_v43, %v618_v56  ;;  %v637_v58 = vmul.f32 %v626_v44, %v614_v55  ;;  %1363 = vrot.lane.b32.xlu1 %v2754_v39, %s2437_s30  ;;  %v534_v55 = vrot.slane %v2225_v46, %v2640_v13  ;;  %v538_v56 = vrot.slane %v2225_v46, %v2642_v14 }
  0xcb   : > { %1371 = vrot.lane.b32.xlu0 %v2759_v42, %s2437_s30 }
  0xcc   : > { %v606_v59 = vpop.permute.xlu1 %605  ;;  %786 = vmatprep.subr.mxu0 %v638_v57  ;;  %v598_v60 = vpop.permute.xlu0 %597 }
  0xcd   : > { %v613_v61 = vsel %vm611_vm4, %v598_v60, %v606_v59  ;;  %v617_v62 = vsel %vm611_vm4, %v606_v59, %v598_v60  ;;  %787 = vmatpush2.msra.mxu0 %v637_v58 }
  0xce   : > { %v636_v63 = vmul.f32 %v630_v43, %v617_v62  ;;  %v635_v6 = vmul.f32 %v626_v44, %v613_v61  ;;  %1361 = vrot.lane.b32.xlu1 %v2768_v47, %s2437_s30 }
  0xcf   : > { %1369 = vrot.lane.b32.xlu0 %v2773_v50, %s2437_s30 }
  0xd0   : > { %v604_v10 = vpop.permute.xlu1 %603  ;;  %788 = vmatprep.subr.mxu0 %v636_v63  ;;  %v596_v11 = vpop.permute.xlu0 %595 }
  0xd1   : > { %v612_v15 = vsel %vm611_vm4, %v596_v11, %v604_v10  ;;  %v616_v16 = vsel %vm611_vm4, %v604_v10, %v596_v11  ;;  %789 = vmatpush2.msra.mxu0 %v635_v6 }
  0xd2   : > { %v634_v17 = vmul.f32 %v630_v43, %v616_v16  ;;  %v633_v18 = vmul.f32 %v626_v44, %v612_v15  ;;  %1323 = vrot.lane.b32.xlu1 %v2725_v21, %s2438_s7 }
  0xd3   : > { %1331 = vrot.lane.b32.xlu0 %v2728_v24, %s2438_s7 }
  0xd4   : > { %v564_v23 = vpop.permute.xlu1 %563  ;;  %790 = vmatprep.subr.mxu0 %v634_v17  ;;  %v556_v25 = vpop.permute.xlu0 %555 }
  0xd5   : > { %v569_v26 = vsel %vm565_vm5, %v556_v25, %v564_v23  ;;  %v573_v27 = vsel %vm565_vm5, %v564_v23, %v556_v25  ;;  %791 = vmatpush2.msra.mxu0 %v633_v18  ;;  %v2228_v25 = vld [vmem:[%s3896_s1 + $0x10] ss:$8 sm:$0x3] }
  0xd6   : > { %v594_v28 = vmul.f32 %v584_v19, %v573_v27  ;;  %v593_v29 = vmul.f32 %v580_v22, %v569_v26  ;;  %1321 = vrot.lane.b32.xlu1 %v2740_v31, %s2438_s7 }
  0xd7   : > { %1329 = vrot.lane.b32.xlu0 %v2745_v34, %s2438_s7 }
  0xd8   : > { %v562_v30 = vpop.permute.xlu1 %561  ;;  %792 = vmatprep.subr.mxu0 %v594_v28  ;;  %v554_v32 = vpop.permute.xlu0 %553 }
  0xd9   : > { %v568_v33 = vsel %vm565_vm5, %v554_v32, %v562_v30  ;;  %v572_v35 = vsel %vm565_vm5, %v562_v30, %v554_v32  ;;  %793 = vmatpush2.msra.mxu0 %v593_v29 }
  0xda   : > { %v592_v36 = vmul.f32 %v584_v19, %v572_v35  ;;  %v591_v37 = vmul.f32 %v580_v22, %v568_v33  ;;  %1319 = vrot.lane.b32.xlu1 %v2754_v39, %s2438_s7  ;;  %v672_v33 = vrot.slane %v2228_v25, %v2640_v13  ;;  %v676_v35 = vrot.slane %v2228_v25, %v2642_v14 }
  0xdb   : > { %1327 = vrot.lane.b32.xlu0 %v2759_v42, %s2438_s7 }
  0xdc   : > { %v560_v38 = vpop.permute.xlu1 %559  ;;  %794 = vmatprep.subr.mxu0 %v592_v36  ;;  %v552_v40 = vpop.permute.xlu0 %551 }
  0xdd   : > { %v567_v41 = vsel %vm565_vm5, %v552_v40, %v560_v38  ;;  %v571_v43 = vsel %vm565_vm5, %v560_v38, %v552_v40  ;;  %795 = vmatpush2.msra.mxu0 %v591_v37 }
  0xde   : > { %v590_v44 = vmul.f32 %v584_v19, %v571_v43  ;;  %v589_v45 = vmul.f32 %v580_v22, %v567_v41  ;;  %1317 = vrot.lane.b32.xlu1 %v2768_v47, %s2438_s7 }
  0xdf   : > { %1325 = vrot.lane.b32.xlu0 %v2773_v50, %s2438_s7 }
  0xe0   : > { %v558_v48 = vpop.permute.xlu1 %557  ;;  %796 = vmatprep.subr.mxu0 %v590_v44  ;;  %v550_v49 = vpop.permute.xlu0 %549 }
  0xe1   : > { %v566_v51 = vsel %vm565_vm5, %v550_v49, %v558_v48  ;;  %v570_v52 = vsel %vm565_vm5, %v558_v48, %v550_v49  ;;  %797 = vmatpush2.msra.mxu0 %v589_v45 }
  0xe2   : > { %v587_v53 = vmul.f32 %v580_v22, %v566_v51  ;;  %v588_v54 = vmul.f32 %v584_v19, %v570_v52  ;;  %1587 = vrot.lane.b32.xlu1 %v2725_v21, %s2439_s8 }
  0xe3   : > { %1595 = vrot.lane.b32.xlu0 %v2728_v24, %s2439_s8 }
  0xe4   : > { %v518_v57 = vpop.permute.xlu1 %517  ;;  %798 = vmatprep.subr.mxu0 %v588_v54  ;;  %v510_v58 = vpop.permute.xlu0 %509 }
  0xe5   : > { %v523_v59 = vsel %vm519_vm6, %v510_v58, %v518_v57  ;;  %v527_v60 = vsel %vm519_vm6, %v518_v57, %v510_v58  ;;  %799 = vmatpush2.msra.mxu0 %v587_v53 }
  0xe6   : > { %v547_v61 = vmul.f32 %v534_v55, %v523_v59  ;;  %v548_v62 = vmul.f32 %v538_v56, %v527_v60  ;;  %1585 = vrot.lane.b32.xlu1 %v2740_v31, %s2439_s8  ;;  %v266_v60 = vld [vmem:[%s3897_s2 + $0x30] sm:$0xff] }
  0xe7   : > { %1593 = vrot.lane.b32.xlu0 %v2745_v34, %s2439_s8 }
  0xe8   : > { %v516_v63 = vpop.permute.xlu1 %515  ;;  %800 = vmatprep.subr.mxu0 %v548_v62  ;;  %v508_v6 = vpop.permute.xlu0 %507  ;;  %v270_v62 = vld [vmem:[%s3897_s2 + $0x50] sm:$0xff] }
  0xe9   : > { %v522_v9 = vsel %vm519_vm6, %v508_v6, %v516_v63  ;;  %v526_v10 = vsel %vm519_vm6, %v516_v63, %v508_v6  ;;  %801 = vmatpush2.msra.mxu0 %v547_v61  ;;  %v3007_v61 = vld [vmem:[%s3897_s2 + $0x10] sm:$0xff]  ;;  %v269_v63 = vld [vmem:[%s3897_s2 + $0x48] sm:$0xff] }
  0xea   : > { %v545_v11 = vmul.f32 %v534_v55, %v522_v9  ;;  %v546_v15 = vmul.f32 %v538_v56, %v526_v10  ;;  %1583 = vrot.lane.b32.xlu1 %v2754_v39, %s2439_s8  ;;  %v3021_v6 = vld [vmem:[%s3897_s2 + $0x28] sm:$0xff]  ;;  %v272_v10 = vld [vmem:[%s3897_s2 + $0x60] sm:$0xff] }
  0xeb   : > { %1591 = vrot.lane.b32.xlu0 %v2759_v42, %s2439_s8  ;;  %v273_v9 = vld [vmem:[%s3897_s2 + $0x68] sm:$0xff] }
  0xec   : > { %v514_v16 = vpop.permute.xlu1 %513  ;;  %802 = vmatprep.subr.mxu0 %v546_v15  ;;  %v506_v17 = vpop.permute.xlu0 %505  ;;  %v276_v15 = vld [vmem:[%s3897_s2 + $0x80] sm:$0xff] }
  0xed   : > { %v521_v18 = vsel %vm519_vm6, %v506_v17, %v514_v16  ;;  %v525_v19 = vsel %vm519_vm6, %v514_v16, %v506_v17  ;;  %803 = vmatpush2.msra.mxu0 %v545_v11  ;;  %v3039_v11 = vld [vmem:[%s3897_s2 + $0x40] sm:$0xff] }
  0xee   : > { %v543_v22 = vmul.f32 %v534_v55, %v521_v18  ;;  %v544_v23 = vmul.f32 %v538_v56, %v525_v19  ;;  %1581 = vrot.lane.b32.xlu1 %v2768_v47, %s2439_s8  ;;  %v275_v18 = vld [vmem:[%s3897_s2 + $0x78] sm:$0xff] }
  0xef   : > { %1589 = vrot.lane.b32.xlu0 %v2773_v50, %s2439_s8  ;;  %v3061_v19 = vld [vmem:[%s3897_s2 + $0x58] sm:$0xff] }
  0xf0   : > { %v512_v26 = vpop.permute.xlu1 %511  ;;  %804 = vmatprep.subr.mxu0 %v544_v23  ;;  %v504_v27 = vpop.permute.xlu0 %503 }
  0xf1   : > { %v520_v28 = vsel %vm519_vm6, %v504_v27, %v512_v26  ;;  %v524_v29 = vsel %vm519_vm6, %v512_v26, %v504_v27  ;;  %805 = vmatpush2.msra.mxu0 %v543_v22  ;;  %v279_v22 = vld [vmem:[%s3897_s2 + $0x98] sm:$0xff]  ;;  %v278_v26 = vld [vmem:[%s3897_s2 + $0x90] sm:$0xff] }
  0xf2   : > { %v541_v30 = vmul.f32 %v534_v55, %v520_v28  ;;  %v542_v32 = vmul.f32 %v538_v56, %v524_v29  ;;  %1543 = vrot.lane.b32.xlu1 %v2725_v21, %s2440_s9  ;;  %v3083_v27 = vld [vmem:[%s3897_s2 + $0x70] sm:$0xff] }
  0xf3   : > { %1551 = vrot.lane.b32.xlu0 %v2728_v24, %s2440_s9  ;;  %v282_v28 = vld [vmem:[%s3897_s2 + $0xb0] sm:$0xff] }
  0xf4   : > { %v656_v36 = vpop.permute.xlu1 %655  ;;  %806 = vmatprep.subr.mxu0 %v542_v32  ;;  %v648_v37 = vpop.permute.xlu0 %647  ;;  %v281_v32 = vld [vmem:[%s3897_s2 + $0xa8] sm:$0xff] }
  0xf5   : > { %v661_v38 = vsel %vm657_vm7, %v648_v37, %v656_v36  ;;  %807 = vmatpush2.msra.mxu0 %v541_v30  ;;  %v665_v40 = vsel %vm657_vm7, %v656_v36, %v648_v37 }
  0xf6   : > { %808 = vmatprep.subr.mxu0 %v2506_v2  ;;  %v686_v41 = vmul.f32 %v676_v35, %v665_v40  ;;  %v685_v43 = vmul.f32 %v672_v33, %v661_v38  ;;  %1541 = vrot.lane.b32.xlu1 %v2740_v31, %s2440_s9  ;;  %v301_v38 = vld [vmem:[%s3900_s5] sm:$0xff] }
  0xf7   : > { %809 = vmatpush2.msra.mxu0 %v2496_v0  ;;  %1549 = vrot.lane.b32.xlu0 %v2745_v34, %s2440_s9  ;;  %v260_v0 = vld [vmem:[%s3897_s2] sm:$0xff] }
  0xf8   : > { %v654_v44 = vpop.permute.xlu1 %653  ;;  %810 = vmatprep.subr.mxu0 %v2509_v3  ;;  %889 = vmatprep.subr.mxu1 %v686_v41  ;;  %v646_v45 = vpop.permute.xlu0 %645  ;;  %v302_v41 = vld [vmem:[%s3900_s5 + $0x8] sm:$0xff] }
  0xf9   : > { %v660_v46 = vsel %vm657_vm7, %v646_v45, %v654_v44  ;;  %v664_v2 = vsel %vm657_vm7, %v654_v44, %v646_v45  ;;  %811 = vmatpush2.msra.mxu0 %v2499_v1  ;;  %890 = vmatpush1.msra.mxu1 %v685_v43 }
  0xfa   : > { %v683_v48 = vmul.f32 %v672_v33, %v660_v46  ;;  %v684_v49 = vmul.f32 %v676_v35, %v664_v2  ;;  %812 = vmatprep.subr.mxu0 %v2516_v4  ;;  %1539 = vrot.lane.b32.xlu1 %v2754_v39, %s2440_s9  ;;  %v264_v4 = vld [vmem:[%s3897_s2 + $0x20] sm:$0xff]  ;;  %v304_v46 = vld [vmem:[%s3900_s5 + $0x18] sm:$0xff] }
  0xfb   : > { %813 = vmatpush2.msra.mxu0 %v2519_v5  ;;  %1547 = vrot.lane.b32.xlu0 %v2759_v42, %s2440_s9 }
  0xfc   : > { %v652_v3 = vpop.permute.xlu1 %651  ;;  %814 = vmatprep.subr.mxu0 %v2526_v7  ;;  %891 = vmatprep.subr.mxu1 %v684_v49  ;;  %v644_v1 = vpop.permute.xlu0 %643  ;;  %v263_v7 = vld [vmem:[%s3897_s2 + $0x18] sm:$0xff] }
  0xfd   : > { %v659_v51 = vsel %vm657_vm7, %v644_v1, %v652_v3  ;;  %v663_v5 = vsel %vm657_vm7, %v652_v3, %v644_v1  ;;  %815 = vmatpush2.msra.mxu0 %v2529_v8  ;;  %892 = vmatpush1.msra.mxu1 %v683_v48  ;;  %v267_v8 = vld [vmem:[%s3897_s2 + $0x38] sm:$0xff]  ;;  %v306_v1 = vld [vmem:[%s3900_s5 + $0x28] sm:$0xff] }
  0xfe   : > { %v681_v52 = vmul.f32 %v672_v33, %v659_v51  ;;  %v682_v53 = vmul.f32 %v676_v35, %v663_v5  ;;  %817 = vmatmul.mubr.f32.vlgmr.msra.gmra.mxu0 %v260_v0  ;;  %1537 = vrot.lane.b32.xlu1 %v2768_v47, %s2440_s9  ;;  %v305_v0 = vld [vmem:[%s3900_s5 + $0x20] sm:$0xff] }
  0xff   : > { %822 = vmatprep.mubr.f32.mxu0 %v264_v4  ;;  %1545 = vrot.lane.b32.xlu0 %v2773_v50, %s2440_s9 }
 0x100   : > { %v650_v54 = vpop.permute.xlu1 %649  ;;  %893 = vmatprep.subr.mxu1 %v682_v53 }
 0x101   : > { %v642_v55 = vpop.permute.xlu0 %641  ;;  %894 = vmatpush1.msra.mxu1 %v681_v52  ;;  %v307_v52 = vld [vmem:[%s3900_s5 + $0x30] sm:$0xff] }
 0x102   : > { %v658_v56 = vsel %vm657_vm7, %v642_v55, %v650_v54  ;;  %v662_v57 = vsel %vm657_vm7, %v650_v54, %v642_v55  ;;  %823 = vmatmul.mubr.f32.gmra.mxu0 %v263_v7  ;;  %1499 = vrot.lane.b32.xlu1 %v2725_v21, %s2441_s10  ;;  %v308_v7 = vld [vmem:[%s3900_s5 + $0x38] sm:$0xff] }
 0x103   : > { %v679_v58 = vmul.f32 %v672_v33, %v658_v56  ;;  %v680_v59 = vmul.f32 %v676_v35, %v662_v57  ;;  %828 = vmatprep.mubr.f32.mxu0 %v267_v8  ;;  %1507 = vrot.lane.b32.xlu0 %v2728_v24, %s2441_s10  ;;  %v280_v35 = vld [vmem:[%s3897_s2 + $0xa0] sm:$0xff] }
 0x104   : > { %v309_v56 = vld [vmem:[%s3900_s5 + $0x40] sm:$0xff] }
 0x105   : > { %895 = vmatprep.subr.mxu1 %v680_v59 }
 0x106   : > { %896 = vmatpush1.msra.mxu1 %v679_v58  ;;  %829 = vmatmul.mubr.f32.gmra.mxu0 %v266_v60 }
 0x107   : > { %2229 = vmatmul.mubr.msk.f32.vlgmr.msra.gmra.mxu1 %vm727_vm8, %v3007_v61  ;;  %834 = vmatprep.mubr.f32.mxu0 %v270_v62 }
 0x108   : > { %935 = vmatprep.mubr.f32.mxu1 %v3902_v20  ;;  %1497 = vrot.lane.b32.xlu1 %v2740_v31, %s2441_s10 }
 0x109   : > { %1505 = vrot.lane.b32.xlu0 %v2745_v34, %s2441_s10 }
 0x10a   : > { %835 = vmatmul.mubr.f32.gmra.mxu0 %v269_v63 }
 0x10b   : > { %2230 = vmatmul.mubr.msk.f32.gmra.mxu1 %vm727_vm8, %v3021_v6  ;;  %840 = vmatprep.mubr.f32.mxu0 %v273_v9 }
 0x10c   : > { %941 = vmatprep.mubr.f32.mxu1 %v3902_v20  ;;  %1495 = vrot.lane.b32.xlu1 %v2754_v39, %s2441_s10 }
 0x10d   : > { %v3046_v16 = vpop.permute.xlu1 %699  ;;  %1503 = vrot.lane.b32.xlu0 %v2759_v42, %s2441_s10 }
 0x10e   : > { %3930 = vst [vmem:[#allocation2_spill] sm:$0xff] %v3046_v16  ;;  %841 = vmatmul.mubr.f32.gmra.mxu0 %v272_v10  ;;  %v3050_v17 = vpop.permute.xlu0 %704 }
 0x10f   : > { %3931 = vst [vmem:[#allocation3_spill] sm:$0xff] %v3050_v17  ;;  %2231 = vmatmul.mubr.msk.f32.gmra.mxu1 %vm727_vm8, %v3039_v11  ;;  %846 = vmatprep.mubr.f32.mxu0 %v276_v15 }
 0x110   : > { %947 = vmatprep.mubr.f32.mxu1 %v3902_v20  ;;  %1493 = vrot.lane.b32.xlu1 %v2768_v47, %s2441_s10 }
 0x111   : > { %v3068_v23 = vpop.permute.xlu1 %694  ;;  %1501 = vrot.lane.b32.xlu0 %v2773_v50, %s2441_s10 }
 0x112   : > { %3932 = vst [vmem:[#allocation4_spill] sm:$0xff] %v3068_v23  ;;  %847 = vmatmul.mubr.f32.gmra.mxu0 %v275_v18  ;;  %v3072_v25 = vpop.permute.xlu0 %689 }
 0x113   : > { %3933 = vst [vmem:[#allocation5_spill] sm:$0xff] %v3072_v25  ;;  %2232 = vmatmul.mubr.msk.f32.gmra.mxu1 %vm727_vm8, %v3061_v19  ;;  %852 = vmatprep.mubr.f32.mxu0 %v279_v22 }
 0x114   : > { %953 = vmatprep.mubr.f32.mxu1 %v3902_v20  ;;  %1631 = vrot.lane.b32.xlu1 %v2725_v21, %s2442_s13  ;;  %v3105_v21 = vld [vmem:[%s3897_s2 + $0x88] sm:$0xff] }
 0x115   : > { %v3090_v29 = vpop.permute.xlu1 %724  ;;  %1639 = vrot.lane.b32.xlu0 %v2728_v24, %s2442_s13 }
 0x116   : > { %853 = vmatmul.mubr.f32.gmra.mxu0 %v278_v26  ;;  %v3094_v30 = vpop.permute.xlu0 %719 }
 0x117   : > { %3934 = vst [vmem:[#allocation6_spill] sm:$0xff] %v3094_v30  ;;  %2233 = vmatmul.mubr.msk.f32.gmra.mxu1 %vm727_vm8, %v3083_v27  ;;  %858 = vmatprep.mubr.f32.mxu0 %v282_v28 }
 0x118   : > { %959 = vmatprep.mubr.f32.mxu1 %v3902_v20  ;;  %1629 = vrot.lane.b32.xlu1 %v2740_v31, %s2442_s13 }
 0x119   : > { %v3109_v24 = vpop.permute.xlu1 %714  ;;  %1637 = vrot.lane.b32.xlu0 %v2745_v34, %s2442_s13 }
 0x11a   : > { %859 = vmatmul.mubr.f32.gmra.mxu0 %v281_v32  ;;  %v3113_v33 = vpop.permute.xlu0 %709 }
 0x11b   : > { %2234 = vmatmul.mubr.msk.f32.gmra.mxu1 %vm727_vm8, %v3105_v21  ;;  %1846 = vmatprep.mubr.f32.mxu0 %v3902_v20 }
 0x11c   : > { %965 = vmatprep.mubr.f32.mxu1 %v3902_v20  ;;  %1627 = vrot.lane.b32.xlu1 %v2754_v39, %s2442_s13  ;;  %v283_v39 = vld [vmem:[%s3897_s2 + $0xb8] sm:$0xff] }
 0x11d   : > { %v1456_v31 = vpop.permute.xlu1 %1455  ;;  %1635 = vrot.lane.b32.xlu0 %v2759_v42, %s2442_s13 }
 0x11e   : > { %v1464_v34 = vpop.permute.xlu0 %1463 }
 0x11f   : > { %2235 = vmatmul.mubr.msk.f32.gmra.mxu1 %vm727_vm8, %v280_v35  ;;  %v3129_v36 = vsel %vm473_vm0, %v1456_v31, %v1464_v34  ;;  %v3133_v37 = vsel %vm473_vm0, %v1464_v34, %v1456_v31 }
 0x120   : > { %971 = vmatprep.mubr.f32.mxu1 %v3902_v20  ;;  %1625 = vrot.lane.b32.xlu1 %v2768_v47, %s2442_s13 }
 0x121   : > { %v1454_v42 = vpop.permute.xlu1 %1453  ;;  %1633 = vrot.lane.b32.xlu0 %v2773_v50, %s2442_s13  ;;  %v303_v50 = vld [vmem:[%s3900_s5 + $0x10] sm:$0xff] }
 0x122   : > { %v1462_v40 = vpop.permute.xlu0 %1461 }
 0x123   : > { %2236 = vmatmul.mubr.msk.f32.gmra.mxu1 %vm727_vm8, %v283_v39  ;;  %v3152_v43 = vsel %vm473_vm0, %v1454_v42, %v1462_v40  ;;  %v3156_v47 = vsel %vm473_vm0, %v1462_v40, %v1454_v42 }
 0x124   : > { %1036 = vperm.xlu1 %2327, %v301_v38   ;;  %1122 = vmatprep.mubr.f32.mxu1 %v3902_v20 }
 0x125   : > { %v1452_v44 = vpop.permute.xlu1 %1451  ;;  %1041 = vperm.xlu0 %2326, %v302_v41  }
 0x126   : > { %v1460_v45 = vpop.permute.xlu0 %1459 }
 0x127   : > { %v3167_v2 = vsel %vm473_vm0, %v1452_v44, %v1460_v45  ;;  %v3171_v48 = vsel %vm473_vm0, %v1460_v45, %v1452_v44 }
 0x128   : > { %1046 = vperm.xlu1 %2327, %v303_v50  }
 0x129   : > { %v1450_v49 = vpop.permute.xlu1 %1449  ;;  %1149 = vperm.xlu0 %2326, %v304_v46  }
 0x12a   : > { %v1458_v3 = vpop.permute.xlu0 %1457 }
 0x12b   : > { %v3181_v4 = vsel %vm473_vm0, %v1450_v49, %v1458_v3  ;;  %v3185_v51 = vsel %vm473_vm0, %v1458_v3, %v1450_v49 }
 0x12c   : > { %1154 = vperm.xlu1 %2327, %v305_v0  }
 0x12d   : > { %v1412_v5 = vpop.permute.xlu1 %1411  ;;  %1159 = vperm.xlu0 %2326, %v306_v1  }
 0x12e   : > { %v1420_v53 = vpop.permute.xlu0 %1419 }
 0x12f   : > { %v3195_v54 = vsel %vm427_vm1, %v1412_v5, %v1420_v53  ;;  %v3199_v8 = vsel %vm427_vm1, %v1420_v53, %v1412_v5 }
 0x130   : > { %1164 = vperm.xlu1 %2327, %v307_v52  }
 0x131   : > { %v1410_v55 = vpop.permute.xlu1 %1409  ;;  %1169 = vperm.xlu0 %2326, %v308_v7  }
 0x132   : > { %v1418_v57 = vpop.permute.xlu0 %1417 }
 0x133   : > { %v3206_v58 = vsel %vm427_vm1, %v1410_v55, %v1418_v57  ;;  %v3210_v59 = vsel %vm427_vm1, %v1418_v57, %v1410_v55 }
 0x134   : > { %1174 = vperm.xlu1 %2327, %v309_v56  }
 0x135   : > { %v1408_v60 = vpop.permute.xlu1 %1407 }
 0x136   : > { %v1416_v62 = vpop.permute.xlu0 %1415 }
 0x137   : > { %v3214_v63 = vsel %vm427_vm1, %v1408_v60, %v1416_v62  ;;  %v3218_v9 = vsel %vm427_vm1, %v1416_v62, %v1408_v60 }
 0x139   : > { %v1406_v10 = vpop.permute.xlu1 %1405 }
 0x13a   : > { %v1414_v15 = vpop.permute.xlu0 %1413 }
 0x13b   : > { %v3222_v18 = vsel %vm427_vm1, %v1406_v10, %v1414_v15  ;;  %v3226_v22 = vsel %vm427_vm1, %v1414_v15, %v1406_v10 }
 0x13d   : > { %v1368_v26 = vpop.permute.xlu1 %1367 }
 0x13e   : > { %v1376_v28 = vpop.permute.xlu0 %1375 }
 0x13f   : > { %v3230_v32 = vsel %vm381_vm2, %v1368_v26, %v1376_v28  ;;  %v3234_v35 = vsel %vm381_vm2, %v1376_v28, %v1368_v26 }
 0x141   : > { %v1366_v31 = vpop.permute.xlu1 %1365 }
 0x142   : > { %v1374_v34 = vpop.permute.xlu0 %1373 }
 0x143   : > { %v3238_v39 = vsel %vm381_vm2, %v1366_v31, %v1374_v34  ;;  %v3242_v42 = vsel %vm381_vm2, %v1374_v34, %v1366_v31 }
 0x145   : > { %v1364_v38 = vpop.permute.xlu1 %1363 }
 0x146   : > { %v1372_v40 = vpop.permute.xlu0 %1371 }
 0x147   : > { %v3246_v41 = vsel %vm381_vm2, %v1364_v38, %v1372_v40  ;;  %v3250_v44 = vsel %vm381_vm2, %v1372_v40, %v1364_v38 }
 0x149   : > { %v1362_v50 = vpop.permute.xlu1 %1361 }
 0x14a   : > { %v1370_v45 = vpop.permute.xlu0 %1369 }
 0x14b   : > { %v3254_v46 = vsel %vm381_vm2, %v1362_v50, %v1370_v45  ;;  %v3258_v49 = vsel %vm381_vm2, %v1370_v45, %v1362_v50 }
 0x14d   : > { %v1324_v0 = vpop.permute.xlu1 %1323 }
 0x14e   : > { %v1332_v3 = vpop.permute.xlu0 %1331 }
 0x14f   : > { %v3262_v1 = vsel %vm336_vm3, %v1324_v0, %v1332_v3  ;;  %v3266_v5 = vsel %vm336_vm3, %v1332_v3, %v1324_v0 }
 0x150   : > { %3935 = vst [vmem:[#allocation7_spill] sm:$0xff] %v3266_v5 }
 0x151   : > { %v1322_v52 = vpop.permute.xlu1 %1321 }
 0x152   : > { %v1330_v53 = vpop.permute.xlu0 %1329 }
 0x153   : > { %v3270_v7 = vsel %vm336_vm3, %v1322_v52, %v1330_v53  ;;  %v3274_v55 = vsel %vm336_vm3, %v1330_v53, %v1322_v52 }
 0x154   : > { %3936 = vst [vmem:[#allocation8_spill] sm:$0xff] %v3270_v7  ;;  %3937 = vst [vmem:[#allocation9_spill] sm:$0xff] %v3274_v55 }
 0x155   : > { %v1320_v56 = vpop.permute.xlu1 %1319 }
 0x156   : > { %v1328_v57 = vpop.permute.xlu0 %1327 }
 0x157   : > { %v3278_v60 = vsel %vm336_vm3, %v1320_v56, %v1328_v57  ;;  %v3282_v62 = vsel %vm336_vm3, %v1328_v57, %v1320_v56 }
 0x158   : > { %3938 = vst [vmem:[#allocation10_spill] sm:$0xff] %v3278_v60  ;;  %3939 = vst [vmem:[#allocation11_spill] sm:$0xff] %v3282_v62 }
 0x159   : > { %v1318_v10 = vpop.permute.xlu1 %1317 }
 0x15a   : > { %v1326_v15 = vpop.permute.xlu0 %1325 }
 0x15b   : > { %v3286_v26 = vsel %vm336_vm3, %v1318_v10, %v1326_v15  ;;  %v3290_v28 = vsel %vm336_vm3, %v1326_v15, %v1318_v10 }
 0x15c   : > { %3940 = vst [vmem:[#allocation12_spill] sm:$0xff] %v3286_v26  ;;  %3941 = vst [vmem:[#allocation13_spill] sm:$0xff] %v3290_v28 }
 0x15d   : > { %v1588_v31 = vpop.permute.xlu1 %1587 }
 0x15e   : > { %v1596_v34 = vpop.permute.xlu0 %1595 }
 0x15f   : > { %v3294_v38 = vsel %vm611_vm4, %v1588_v31, %v1596_v34  ;;  %v3298_v40 = vsel %vm611_vm4, %v1596_v34, %v1588_v31 }
 0x160   : > { %3942 = vst [vmem:[#allocation14_spill] sm:$0xff] %v3294_v38  ;;  %3943 = vst [vmem:[#allocation15_spill] sm:$0xff] %v3298_v40 }
 0x161   : > { %v1586_v50 = vpop.permute.xlu1 %1585 }
 0x162   : > { %v1594_v45 = vpop.permute.xlu0 %1593 }
 0x163   : > { %v3302_v0 = vsel %vm611_vm4, %v1586_v50, %v1594_v45  ;;  %v3306_v3 = vsel %vm611_vm4, %v1594_v45, %v1586_v50 }
 0x164   : > { %3944 = vst [vmem:[#allocation16_spill] sm:$0xff] %v3302_v0  ;;  %3945 = vst [vmem:[#allocation17_spill] sm:$0xff] %v3306_v3 }
 0x165   : > { %v1584_v52 = vpop.permute.xlu1 %1583 }
 0x166   : > { %v1592_v53 = vpop.permute.xlu0 %1591 }
 0x167   : > { %v3310_v56 = vsel %vm611_vm4, %v1584_v52, %v1592_v53  ;;  %v3314_v57 = vsel %vm611_vm4, %v1592_v53, %v1584_v52 }
 0x168   : > { %3946 = vst [vmem:[#allocation18_spill] sm:$0xff] %v3310_v56  ;;  %3947 = vst [vmem:[#allocation19_spill] sm:$0xff] %v3314_v57 }
 0x169   : > { %v1582_v10 = vpop.permute.xlu1 %1581 }
 0x16a   : > { %v1590_v15 = vpop.permute.xlu0 %1589 }
 0x16b   : > { %v3318_v31 = vsel %vm611_vm4, %v1582_v10, %v1590_v15  ;;  %v3322_v34 = vsel %vm611_vm4, %v1590_v15, %v1582_v10 }
 0x16c   : > { %3948 = vst [vmem:[#allocation20_spill] sm:$0xff] %v3318_v31  ;;  %3949 = vst [vmem:[#allocation21_spill] sm:$0xff] %v3322_v34 }
 0x16d   : > { %v1544_v50 = vpop.permute.xlu1 %1543 }
 0x16e   : > { %v1552_v45 = vpop.permute.xlu0 %1551 }
 0x16f   : > { %v3326_v20 = vsel %vm565_vm5, %v1544_v50, %v1552_v45  ;;  %v3330_v52 = vsel %vm565_vm5, %v1552_v45, %v1544_v50 }
 0x170   : > { %3950 = vst [vmem:[#allocation22_spill] sm:$0xff] %v3326_v20  ;;  %3951 = vst [vmem:[#allocation23_spill] sm:$0xff] %v3330_v52 }
 0x171   : > { %v1542_v53 = vpop.permute.xlu1 %1541 }
 0x172   : > { %v1550_v56 = vpop.permute.xlu0 %1549 }
 0x173   : > { %v3334_v57 = vsel %vm565_vm5, %v1542_v53, %v1550_v56  ;;  %v3338_v10 = vsel %vm565_vm5, %v1550_v56, %v1542_v53 }
 0x174   : > { %3952 = vst [vmem:[#allocation24_spill] sm:$0xff] %v3334_v57  ;;  %3953 = vst [vmem:[#allocation25_spill] sm:$0xff] %v3338_v10 }
 0x175   : > { %v1540_v15 = vpop.permute.xlu1 %1539 }
 0x176   : > { %v1548_v31 = vpop.permute.xlu0 %1547 }
 0x177   : > { %v3342_v34 = vsel %vm565_vm5, %v1540_v15, %v1548_v31  ;;  %v3346_v50 = vsel %vm565_vm5, %v1548_v31, %v1540_v15 }
 0x178   : > { %3954 = vst [vmem:[#allocation26_spill] sm:$0xff] %v3342_v34  ;;  %3955 = vst [vmem:[#allocation27_spill] sm:$0xff] %v3346_v50 }
 0x179   : > { %v1538_v45 = vpop.permute.xlu1 %1537 }
 0x17a   : > { %v1546_v20 = vpop.permute.xlu0 %1545 }
 0x17b   : > { %v3350_v52 = vsel %vm565_vm5, %v1538_v45, %v1546_v20  ;;  %v3354_v56 = vsel %vm565_vm5, %v1546_v20, %v1538_v45 }
 0x17c   : > { %3956 = vst [vmem:[#allocation28_spill] sm:$0xff] %v3350_v52  ;;  %3957 = vst [vmem:[#allocation29_spill] sm:$0xff] %v3354_v56 }
 0x17d   : > { %v1500_v53 = vpop.permute.xlu1 %1499 }
 0x17e   : > { %v1508_v57 = vpop.permute.xlu0 %1507 }
 0x17f   : > { %v3358_v10 = vsel %vm519_vm6, %v1500_v53, %v1508_v57  ;;  %v3362_v31 = vsel %vm519_vm6, %v1508_v57, %v1500_v53 }
 0x180   : > { %3958 = vst [vmem:[#allocation30_spill] sm:$0xff] %v3358_v10  ;;  %3959 = vst [vmem:[#allocation31_spill] sm:$0xff] %v3362_v31  ;;  %v2260_v10 = vld [vmem:[%s3896_s1 + $0x10] ss:$8 sm:$0x3] }
 0x181   : > { %v1498_v15 = vpop.permute.xlu1 %1497 }
 0x182   : > { %v1506_v34 = vpop.permute.xlu0 %1505 }
 0x183   : > { %v3366_v50 = vsel %vm519_vm6, %v1498_v15, %v1506_v34  ;;  %v3370_v20 = vsel %vm519_vm6, %v1506_v34, %v1498_v15 }
 0x184   : > { %3960 = vst [vmem:[#allocation32_spill] sm:$0xff] %v3366_v50  ;;  %3961 = vst [vmem:[#allocation33_spill] sm:$0xff] %v3370_v20  ;;  %v1658_v20 = vrot.slane %v2260_v10, %v2642_v14 }
 0x185   : > { %v1496_v45 = vpop.permute.xlu1 %1495 }
 0x186   : > { %v1504_v52 = vpop.permute.xlu0 %1503 }
 0x187   : > { %v3374_v56 = vsel %vm519_vm6, %v1496_v45, %v1504_v52  ;;  %v3378_v57 = vsel %vm519_vm6, %v1504_v52, %v1496_v45 }
 0x188   : > { %3962 = vst [vmem:[#allocation34_spill] sm:$0xff] %v3374_v56  ;;  %3963 = vst [vmem:[#allocation35_spill] sm:$0xff] %v3378_v57  ;;  %v1654_v56 = vrot.slane %v2260_v10, %v2640_v13 }
 0x189   : > { %v1494_v53 = vpop.permute.xlu1 %1493 }
 0x18a   : > { %v1502_v50 = vpop.permute.xlu0 %1501 }
 0x18b   : > { %v3385_v34 = vsel %vm519_vm6, %v1494_v53, %v1502_v50  ;;  %v3389_v15 = vsel %vm519_vm6, %v1502_v50, %v1494_v53 }
 0x18c   : > { %3964 = vst [vmem:[#allocation36_spill] sm:$0xff] %v3385_v34  ;;  %3965 = vst [vmem:[#allocation37_spill] sm:$0xff] %v3389_v15 }
 0x18d   : > { %v1632_v52 = vpop.permute.xlu1 %1631 }
 0x18e   : > { %v1640_v45 = vpop.permute.xlu0 %1639 }
 0x18f   : > { %v1644_v57 = vsel %vm657_vm7, %v1632_v52, %v1640_v45  ;;  %v1648_v31 = vsel %vm657_vm7, %v1640_v45, %v1632_v52 }
 0x190   : > { %v3397_v0 = vmul.f32 %v1654_v56, %v1644_v57  ;;  %v3399_v3 = vmul.f32 %v1658_v20, %v1648_v31 }
 0x191   : > { %v1630_v34 = vpop.permute.xlu1 %1629 }
 0x192   : > { %3966 = vst [vmem:[#allocation38_spill] sm:$0xff] %v3397_v0  ;;  %3967 = vst [vmem:[#allocation39_spill] sm:$0xff] %v3399_v3  ;;  %v1638_v38 = vpop.permute.xlu0 %1637  ;;  %1806 = vmatprep.subr.mxu0 %v3399_v3 }
 0x193   : > { %v1643_v50 = vsel %vm657_vm7, %v1630_v34, %v1638_v38  ;;  %v1647_v10 = vsel %vm657_vm7, %v1638_v38, %v1630_v34  ;;  %1807 = vmatpush1.msra.mxu0 %v3397_v0 }
 0x194   : > { %v3407_v53 = vmul.f32 %v1654_v56, %v1643_v50  ;;  %v3409_v15 = vmul.f32 %v1658_v20, %v1647_v10 }
 0x195   : > { %v1628_v57 = vpop.permute.xlu1 %1627 }
 0x196   : > { %3968 = vst [vmem:[#allocation40_spill] sm:$0xff] %v3407_v53  ;;  %3969 = vst [vmem:[#allocation41_spill] sm:$0xff] %v3409_v15  ;;  %v1636_v52 = vpop.permute.xlu0 %1635  ;;  %1808 = vmatprep.subr.mxu0 %v3409_v15 }
 0x197   : > { %v1642_v31 = vsel %vm657_vm7, %v1628_v57, %v1636_v52  ;;  %v1646_v45 = vsel %vm657_vm7, %v1636_v52, %v1628_v57  ;;  %1809 = vmatpush1.msra.mxu0 %v3407_v53  ;;  %v3974_v52 = vmov 0.0  }
 0x198   : > { %v3417_v3 = vmul.f32 %v1654_v56, %v1642_v31  ;;  %v3419_v38 = vmul.f32 %v1658_v20, %v1646_v45 }
 0x199   : > { %v1626_v34 = vpop.permute.xlu1 %1625 }
 0x19a   : > { %3970 = vst [vmem:[#allocation42_spill] sm:$0xff] %v3417_v3  ;;  %3971 = vst [vmem:[#allocation43_spill] sm:$0xff] %v3419_v38  ;;  %v1634_v50 = vpop.permute.xlu0 %1633  ;;  %1810 = vmatprep.subr.mxu0 %v3419_v38 }
 0x19b   : > { %v1641_v10 = vsel %vm657_vm7, %v1626_v34, %v1634_v50  ;;  %v1645_v15 = vsel %vm657_vm7, %v1634_v50, %v1626_v34  ;;  %1811 = vmatpush1.msra.mxu0 %v3417_v3 }
 0x19c   : > { %v3427_v0 = vmul.f32 %v1654_v56, %v1641_v10  ;;  %v3429_v57 = vmul.f32 %v1658_v20, %v1645_v15 }
 0x19e   : > { %3972 = vst [vmem:[#allocation44_spill] sm:$0xff] %v3427_v0  ;;  %3973 = vst [vmem:[#allocation45_spill] sm:$0xff] %v3429_v57  ;;  %1812 = vmatprep.subr.mxu0 %v3429_v57 }
 0x19f   : > { %1813 = vmatpush1.msra.mxu0 %v3427_v0 }
 0x1a0   : > { %2261 = vmatmul.mubr.msk.f32.vlgmr.msra.gmra.mxu0 %vm727_vm8, %v3007_v61 }
 0x1a1   : > { %1852 = vmatprep.mubr.f32.mxu0 %v3974_v52 }
 0x1a4   : > { %2262 = vmatmul.mubr.msk.f32.gmra.mxu0 %vm727_vm8, %v3021_v6 }
 0x1a5   : > { %1858 = vmatprep.mubr.f32.mxu0 %v3974_v52 }
 0x1a8   : > { %2263 = vmatmul.mubr.msk.f32.gmra.mxu0 %vm727_vm8, %v3039_v11 }
 0x1a9   : > { %1864 = vmatprep.mubr.f32.mxu0 %v3974_v52 }
 0x1ac   : > { %2264 = vmatmul.mubr.msk.f32.gmra.mxu0 %vm727_vm8, %v3061_v19 }
 0x1ad   : > { %1870 = vmatprep.mubr.f32.mxu0 %v3974_v52 }
 0x1b0   : > { %2265 = vmatmul.mubr.msk.f32.gmra.mxu0 %vm727_vm8, %v3083_v27 }
 0x1b1   : > { %1876 = vmatprep.mubr.f32.mxu0 %v3974_v52 }
 0x1b4   : > { %2266 = vmatmul.mubr.msk.f32.gmra.mxu0 %vm727_vm8, %v3105_v21 }
 0x1b5   : > { %2015 = vmatprep.mubr.f32.mxu0 %v3974_v52 }
 0x1be   : > { %v818_v12 = vpop.f32.mrf.mxu0 }
 0x1bf   : > { %v819_v62 = vadd.f32 %v818_v12, %v3072_v25 }
 0x1c0   : > { %v820_v61 = vpop.f32.mrf.mxu0 }
 0x1c1   : > { %v821_v31 = vadd.f32 %v820_v61, %v3072_v25 }
 0x1c2   : > { %v824_v6 = vpop.f32.mrf.mxu0 }
 0x1c3   : > { %v825_v38 = vadd.f32 %v824_v6, %v3068_v23 }
 0x1c4   : > { %v826_v11 = vpop.f32.mrf.mxu0 }
 0x1c5   : > { %v827_v27 = vadd.f32 %v826_v11, %v3068_v23 }
 0x1c6   : > { %v830_v56 = vpop.f32.mrf.mxu0 }
 0x1c7   : > { %v931_v20 = vpop.f32.mrf.mxu1  ;;  %v831_v21 = vadd.f32 %v830_v56, %v3046_v16 }
 0x1c8   : > { %v832_v15 = vpop.f32.mrf.mxu0 }
 0x1c9   : > { %v933_v19 = vpop.f32.mrf.mxu1  ;;  %v833_v40 = vadd.f32 %v832_v15, %v3046_v16 }
 0x1ca   : > { %v836_v45 = vpop.f32.mrf.mxu0  ;;  %v934_v50 = vadd.f32 %v933_v19, %v821_v31 }
 0x1cb   : > { %v937_v34 = vpop.f32.mrf.mxu1  ;;  %v837_v31 = vadd.f32 %v836_v45, %v3050_v17 }
 0x1cc   : > { %v838_v10 = vpop.f32.mrf.mxu0  ;;  %v979_v28 = vmul.f32 0.5, %v934_v50  ;;  %v938_v60 = vadd.f32 %v937_v34, %v825_v38 }
 0x1cd   : > { %v939_v0 = vpop.f32.mrf.mxu1  ;;  %v839_v6 = vadd.f32 %v838_v10, %v3050_v17 }
 0x1ce   : > { %v940_v57 = vadd.f32 %v939_v0, %v827_v27  ;;  %v3454_v3 = vpop.f32.mrf.mxu0  ;;  %v932_v0 = vadd.f32 %v931_v20, %v819_v62  ;;  %2328 = vtanh.f32 %v979_v28 }
 0x1cf   : > { %v943_v53 = vpop.f32.mrf.mxu1 }
 0x1d0   : > { %v944_v26 = vadd.f32 %v943_v53, %v831_v21  ;;  %v844_v61 = vpop.f32.mrf.mxu0  ;;  %v981_v11 = vmul.f32 0.5, %v940_v57  ;;  %v980_v53 = vmul.f32 0.5, %v938_v60  ;;  %v978_v34 = vmul.f32 0.5, %v932_v0 }
 0x1d1   : > { %v945_v19 = vpop.f32.mrf.mxu1 }
 0x1d2   : > { %v946_v55 = vadd.f32 %v945_v19, %v833_v40  ;;  %v848_v56 = vpop.f32.mrf.mxu0  ;;  %v982_v27 = vmul.f32 0.5, %v944_v26  ;;  %2330 = vtanh.f32 %v981_v11 }
 0x1d3   : > { %v949_v7 = vpop.f32.mrf.mxu1 }
 0x1d4   : > { %v983_v23 = vmul.f32 0.5, %v946_v55  ;;  %v950_v15 = vadd.f32 %v949_v7, %v837_v31  ;;  %v850_v50 = vpop.f32.mrf.mxu0 }
 0x1d5   : > { %v951_v21 = vpop.f32.mrf.mxu1 }
 0x1d6   : > { %2332 = vtanh.f32 %v983_v23  ;;  %v984_v38 = vmul.f32 0.5, %v950_v15  ;;  %v952_v57 = vadd.f32 %v951_v21, %v839_v6  ;;  %v854_v12 = vpop.f32.mrf.mxu0  ;;  %v851_v6 = vadd.f32 %v850_v50, %v3109_v24 }
 0x1d7   : > { %2334 = vtanh.f32 %v982_v27  ;;  %v955_v40 = vpop.f32.mrf.mxu1  ;;  %v855_v15 = vadd.f32 %v854_v12, %v3094_v30  ;;  %v843_v12 = vadd.f32 %v3454_v3, %v3113_v33 }
 0x1d8   : > { %2336 = vtanh.f32 %v984_v38  ;;  %v985_v62 = vmul.f32 0.5, %v952_v57  ;;  %v856_v26 = vpop.f32.mrf.mxu0 }
 0x1d9   : > { %2338 = vtanh.f32 %v980_v53  ;;  %v957_v28 = vpop.f32.mrf.mxu1  ;;  %v857_v45 = vadd.f32 %v856_v26, %v3094_v30  ;;  %v849_v26 = vadd.f32 %v848_v56, %v3109_v24 }
 0x1da   : > { %2340 = vtanh.f32 %v985_v62  ;;  %v860_v7 = vpop.f32.mrf.mxu0  ;;  %v845_v62 = vadd.f32 %v844_v61, %v3113_v33 }
 0x1db   : > { %2342 = vtanh.f32 %v978_v34  ;;  %v961_v55 = vpop.f32.mrf.mxu1  ;;  %v2329_v23 = vpop.eup %2328  ;;  %v861_v31 = vadd.f32 %v860_v7, %v3090_v29 }
 0x1dc   : > { %v862_v10 = vpop.f32.mrf.mxu0  ;;  %v958_v56 = vadd.f32 %v957_v28, %v845_v62 }
 0x1dd   : > { %v963_v20 = vpop.f32.mrf.mxu1  ;;  %v863_v38 = vadd.f32 %v862_v10, %v3090_v29  ;;  %v962_v10 = vadd.f32 %v961_v55, %v849_v26  ;;  %v2397_v26 = vld [vmem:[%s2493_s27 + $0x10] sm:$0xff] }
 0x1de   : > { %v964_v17 = vadd.f32 %v963_v20, %v851_v6 }
 0x1df   : > { %v967_v60 = vpop.f32.mrf.mxu1  ;;  %v2331_v19 = vpop.eup %2330 }
 0x1e0   : > { %v968_v16 = vadd.f32 %v967_v60, %v855_v15 }
 0x1e1   : > { %v969_v11 = vpop.f32.mrf.mxu1 }
 0x1e2   : > { %v970_v0 = vadd.f32 %v969_v11, %v857_v45 }
 0x1e3   : > { %v2333_v27 = vpop.eup %2332  ;;  %v973_v53 = vpop.f32.mrf.mxu1 }
 0x1e4   : > { %v2335_v21 = vpop.eup %2334  ;;  %v974_v57 = vadd.f32 %v973_v53, %v861_v31  ;;  %v999_v45 = vmul.f32 0.5, %v2333_v27  ;;  %2344 = vtanh.f32 %v970_v0  ;;  %v997_v53 = vmul.f32 0.5, %v2331_v19 }
 0x1e5   : > { %v2337_v34 = vpop.eup %2336  ;;  %v975_v25 = vpop.f32.mrf.mxu1  ;;  %v998_v30 = vmul.f32 0.5, %v2335_v21  ;;  %v956_v27 = vadd.f32 %v955_v40, %v843_v12  ;;  %v995_v0 = vmul.f32 0.5, %v2329_v23  ;;  %v2393_v21 = vld [vmem:[%s2493_s27 + $0x30] sm:$0xff]  ;;  %v2394_v23 = vld [vmem:[%s2493_s27 + $0x28] sm:$0xff]  ;;  %v2399_v12 = vld [vmem:[%s2493_s27] sm:$0xff] }
 0x1e6   : > { %v2339_v7 = vpop.eup %2338  ;;  %v1000_v11 = vmul.f32 0.5, %v2337_v34  ;;  %v976_v50 = vadd.f32 %v975_v25, %v863_v38  ;;  %2346 = vtanh.f32 %v974_v57  ;;  %v1007_v25 = vadd.f32 0.5, %v999_v45  ;;  %v2396_v34 = vld [vmem:[%s2493_s27 + $0x18] sm:$0xff]  ;;  %v2398_v45 = vld [vmem:[%s2493_s27 + $0x8] sm:$0xff] }
 0x1e7   : > { %v2341_v5 = vpop.eup %2340  ;;  %v996_v20 = vmul.f32 0.5, %v2339_v7  ;;  %v1006_v15 = vadd.f32 0.5, %v998_v30  ;;  %v1005_v55 = vadd.f32 0.5, %v997_v53  ;;  %v2395_v30 = vld [vmem:[%s2493_s27 + $0x20] sm:$0xff] }
 0x1e8   : > { %v2343_v31 = vpop.eup %2342  ;;  %v1001_v61 = vmul.f32 0.5, %v2341_v5  ;;  %2348 = vtanh.f32 %v976_v50  ;;  %v1008_v60 = vadd.f32 0.5, %v1000_v11  ;;  %v2392_v5 = vld [vmem:[%s2493_s27 + $0x38] sm:$0xff]  ;;  %v1015_v38 = vmul.f32 %v2394_v23, %v1007_v25  ;;  %v3492_v25 = vld [vmem:[%s3899_s4 + $0x8] sm:$0xff] }
 0x1e9   : > { %2350 = vtanh.f32 %v968_v16  ;;  %v994_v3 = vmul.f32 0.5, %v2343_v31  ;;  %v1004_v19 = vadd.f32 0.5, %v996_v20  ;;  %v1003_v16 = vadd.f32 0.5, %v995_v0  ;;  %v3481_v31 = vld [vmem:[%s3899_s4] sm:$0xff] }
 0x1ea   : > { %v1009_v6 = vadd.f32 0.5, %v1001_v61  ;;  %2352 = vtanh.f32 %v964_v17  ;;  %v1016_v40 = vmul.f32 %v2393_v21, %v1008_v60  ;;  %v1014_v57 = vmul.f32 %v2395_v30, %v1006_v15 }
 0x1eb   : > { %2354 = vtanh.f32 %v962_v10  ;;  %v1002_v17 = vadd.f32 0.5, %v994_v3  ;;  %v1013_v62 = vmul.f32 %v2396_v34, %v1005_v55  ;;  %v1012_v7 = vmul.f32 %v2397_v26, %v1004_v19 }
 0x1ec   : > { %2356 = vtanh.f32 %v958_v56  ;;  %v1017_v28 = vmul.f32 %v2392_v5, %v1009_v6  ;;  %v1011_v11 = vmul.f32 %v2398_v45, %v1003_v16 }
 0x1ed   : > { %2358 = vtanh.f32 %v956_v27  ;;  %v1010_v10 = vmul.f32 %v2399_v12, %v1002_v17  ;;  %v2256_v27 = vld [vmem:[%s3896_s1 + $0x3] ss:$8 sm:$0x3] }
 0x1ee   : > { %1082 = vmatprep.subr.mxu1 %v1017_v28  ;;  %v1482_v28 = vrot.slane %v2256_v27, %v2642_v14 }
 0x1ef   : > { %1083 = vmatpush1.msra.mxu1 %v1016_v40  ;;  %v3501_v40 = vld [vmem:[%s3899_s4 + $0x10] sm:$0xff] }
 0x1f0   : > { %1084 = vmatprep.subr.mxu1 %v1015_v38  ;;  %v1492_v17 = vmul.f32 %v1482_v28, %v3129_v36  ;;  %v1490_v36 = vmul.f32 %v1482_v28, %v3152_v43 }
 0x1f1   : > { %1085 = vmatpush1.msra.mxu1 %v1014_v57  ;;  %v2345_v50 = vpop.eup %2344 }
 0x1f2   : > { %1086 = vmatprep.subr.mxu1 %v1013_v62  ;;  %v1031_v3 = vmul.f32 %v2394_v23, %v2345_v50  ;;  %v1478_v23 = vrot.slane %v2256_v27, %v2640_v13 }
 0x1f3   : > { %1087 = vmatpush1.msra.mxu1 %v1012_v7  ;;  %v2347_v53 = vpop.eup %2346 }
 0x1f4   : > { %1088 = vmatprep.subr.mxu1 %v1011_v11  ;;  %v1032_v0 = vmul.f32 %v2393_v21, %v2347_v53  ;;  %v1491_v57 = vmul.f32 %v1478_v23, %v3133_v37  ;;  %v1489_v62 = vmul.f32 %v1478_v23, %v3156_v47  ;;  %v1488_v37 = vmul.f32 %v1482_v28, %v3167_v2  ;;  %v3539_v2 = vld [vmem:[%s3899_s4 + $0x28] sm:$0xff] }
 0x1f5   : > { %v2349_v61 = vpop.eup %2348  ;;  %1089 = vmatpush1.msra.mxu1 %v1010_v10  ;;  %v1487_v43 = vmul.f32 %v1478_v23, %v3171_v48  ;;  %v1486_v47 = vmul.f32 %v1482_v28, %v3181_v4  ;;  %v1485_v11 = vmul.f32 %v1478_v23, %v3185_v51  ;;  %v2254_v4 = vld [vmem:[%s3896_s1 + $0x1] ss:$8 sm:$0x3] }
 0x1f6   : > { %v2351_v56 = vpop.eup %2350  ;;  %2237 = vmatmul.mubr.msk.f32.vlgmr.msra.gmra.mxu1 %vm727_vm8, %v3481_v31  ;;  %v1033_v20 = vmul.f32 %v2392_v5, %v2349_v61  ;;  %v1394_v10 = vrot.slane %v2254_v4, %v2642_v14  ;;  %v1390_v53 = vrot.slane %v2254_v4, %v2640_v13  ;;  %v3978_v28 = vld [vmem:[#allocation10_spill] sm:$0xff] }
 0x1f7   : > { %v2353_v60 = vpop.eup %2352  ;;  %1128 = vmatprep.mubr.f32.mxu1 %v3974_v52  ;;  %v1030_v55 = vmul.f32 %v2395_v30, %v2351_v56  ;;  %v3511_v30 = vld [vmem:[%s3899_s4 + $0x18] sm:$0xff] }
 0x1f8   : > { %v2355_v6 = vpop.eup %2354  ;;  %1219 = vmatprep.subr.mxu1 %v1033_v20  ;;  %v1029_v19 = vmul.f32 %v2396_v34, %v2353_v60  ;;  %v2255_v34 = vld [vmem:[%s3896_s1 + $0x2] ss:$8 sm:$0x3]  ;;  %v1403_v56 = vmul.f32 %v1390_v53, %v3234_v35  ;;  %v1401_v20 = vmul.f32 %v1390_v53, %v3242_v42  ;;  %v1400_v35 = vmul.f32 %v1394_v10, %v3246_v41 }
 0x1f9   : > { %v2357_v15 = vpop.eup %2356  ;;  %1220 = vmatpush1.msra.mxu1 %v1032_v0  ;;  %v1028_v21 = vmul.f32 %v2397_v26, %v2355_v6  ;;  %v3525_v26 = vld [vmem:[%s3899_s4 + $0x20] sm:$0xff]  ;;  %v1438_v7 = vrot.slane %v2255_v34, %v2642_v14  ;;  %v1398_v42 = vmul.f32 %v1394_v10, %v3254_v46  ;;  %v1397_v0 = vmul.f32 %v1390_v53, %v3258_v49  ;;  %v2400_v41 = vld [vmem:[%s3897_s2 + $0x8] sm:$0xff]  ;;  %v3977_v49 = vld [vmem:[#allocation9_spill] sm:$0xff] }
 0x1fa   : > { %v2359_v5 = vpop.eup %2358  ;;  %2238 = vmatmul.mubr.msk.f32.gmra.mxu1 %vm727_vm8, %v3492_v25  ;;  %1221 = vmatprep.subr.mxu1 %v1031_v3  ;;  %v1027_v16 = vmul.f32 %v2398_v45, %v2357_v15  ;;  %v1434_v45 = vrot.slane %v2255_v34, %v2640_v13  ;;  %v2259_v46 = vld [vmem:[%s3896_s1 + $0x7] ss:$8 sm:$0x3]  ;;  %v3976_v15 = vld [vmem:[#allocation8_spill] sm:$0xff] }
 0x1fb   : > { %1222 = vmatpush1.msra.mxu1 %v1030_v55  ;;  %1134 = vmatprep.mubr.f32.mxu1 %v3974_v52  ;;  %v1026_v38 = vmul.f32 %v2399_v12, %v2359_v5  ;;  %v1448_v48 = vmul.f32 %v1438_v7, %v3195_v54  ;;  %v1446_v51 = vmul.f32 %v1438_v7, %v3206_v58  ;;  %v3554_v54 = vld [vmem:[%s3899_s4 + $0x30] sm:$0xff] }
 0x1fc   : > { %1223 = vmatprep.subr.mxu1 %v1029_v19  ;;  %v1447_v50 = vmul.f32 %v1434_v45, %v3199_v8  ;;  %v1445_v12 = vmul.f32 %v1434_v45, %v3210_v59  ;;  %v1444_v8 = vmul.f32 %v1438_v7, %v3214_v63  ;;  %v1443_v58 = vmul.f32 %v1434_v45, %v3218_v9  ;;  %v3568_v63 = vld [vmem:[%s3899_s4 + $0x38] sm:$0xff] }
 0x1fd   : > { %1224 = vmatpush1.msra.mxu1 %v1028_v21  ;;  %v1442_v59 = vmul.f32 %v1438_v7, %v3222_v18  ;;  %v1441_v61 = vmul.f32 %v1434_v45, %v3226_v22  ;;  %v1404_v9 = vmul.f32 %v1394_v10, %v3230_v32  ;;  %v1341_v18 = vld [vmem:[%s3896_s1] ss:$8 sm:$0x3]  ;;  %v1402_v22 = vmul.f32 %v1394_v10, %v3238_v39  ;;  %v3984_v45 = vld [vmem:[#allocation17_spill] sm:$0xff] }
 0x1fe   : > { %2239 = vmatmul.mubr.msk.f32.gmra.mxu1 %vm727_vm8, %v3501_v40  ;;  %1225 = vmatprep.subr.mxu1 %v1027_v16  ;;  %v3583_v32 = vld [vmem:[%s3899_s4 + $0x40] sm:$0xff]  ;;  %v1350_v60 = vrot.slane %v1341_v18, %v2642_v14  ;;  %v1399_v39 = vmul.f32 %v1390_v53, %v3250_v44  ;;  %v1346_v27 = vrot.slane %v1341_v18, %v2640_v13  ;;  %v3975_v44 = vld [vmem:[#allocation7_spill] sm:$0xff] }
 0x1ff   : > { %1226 = vmatpush1.msra.mxu1 %v1026_v38  ;;  %1259 = vmatprep.mubr.f32.mxu1 %v3974_v52  ;;  %v1614_v21 = vrot.slane %v2259_v46, %v2642_v14  ;;  %v1610_v23 = vrot.slane %v2259_v46, %v2640_v13  ;;  %v3980_v38 = vld [vmem:[#allocation12_spill] sm:$0xff]  ;;  %v3991_v18 = vld [vmem:[#allocation22_spill] sm:$0xff]  ;;  %v3996_v46 = vld [vmem:[#allocation29_spill] sm:$0xff] }
 0x200   : > { %1669 = vmatprep.subr.mxu1 %v1492_v17  ;;  %v1360_v6 = vmul.f32 %v1350_v60, %v3262_v1  ;;  %v1359_v3 = vmul.f32 %v1346_v27, %v3975_v44  ;;  %v1358_v55 = vmul.f32 %v1350_v60, %v3976_v15  ;;  %v1357_v5 = vmul.f32 %v1346_v27, %v3977_v49  ;;  %v3979_v1 = vld [vmem:[#allocation11_spill] sm:$0xff] }
 0x201   : > { %v1356_v19 = vmul.f32 %v1350_v60, %v3978_v28  ;;  %v1355_v16 = vmul.f32 %v1346_v27, %v3979_v1  ;;  %v1354_v17 = vmul.f32 %v1350_v60, %v3980_v38 }
 0x202   : > { %2240 = vmatmul.mubr.msk.f32.vlgmr.msra.gmra.mxu1 %vm727_vm8, %v3511_v30 }
 0x203   : > { %1670 = vmatpush1.msra.mxu1 %v1491_v57  ;;  %1265 = vmatprep.mubr.f32.mxu1 %v3974_v52  ;;  %v3981_v57 = vld [vmem:[#allocation13_spill] sm:$0xff] }
 0x204   : > { %1671 = vmatprep.subr.mxu1 %v1490_v36  ;;  %v1353_v34 = vmul.f32 %v1346_v27, %v3981_v57  ;;  %v3982_v36 = vld [vmem:[#allocation15_spill] sm:$0xff] }
 0x205   : > { %1672 = vmatpush1.msra.mxu1 %v1489_v62  ;;  %v1624_v62 = vmul.f32 %v1614_v21, %v3982_v36 }
 0x206   : > { %1673 = vmatprep.subr.mxu1 %v1488_v37  ;;  %2241 = vmatmul.mubr.msk.f32.gmra.mxu1 %vm727_vm8, %v3525_v26  ;;  %v3983_v37 = vld [vmem:[#allocation14_spill] sm:$0xff] }
 0x207   : > { %1674 = vmatpush1.msra.mxu1 %v1487_v43  ;;  %1271 = vmatprep.mubr.f32.mxu1 %v3974_v52  ;;  %v1623_v7 = vmul.f32 %v1610_v23, %v3983_v37  ;;  %v2258_v43 = vld [vmem:[%s3896_s1 + $0x6] ss:$8 sm:$0x3] }
 0x208   : > { %1675 = vmatprep.subr.mxu1 %v1486_v47  ;;  %v1622_v47 = vmul.f32 %v1614_v21, %v3984_v45  ;;  %v1566_v10 = vrot.slane %v2258_v43, %v2640_v13  ;;  %v3652_v45 = vld [vmem:[%s2493_s27 + $0x68] sm:$0xff] }
 0x209   : > { %1676 = vmatpush1.msra.mxu1 %v1485_v11  ;;  %v3985_v11 = vld [vmem:[#allocation16_spill] sm:$0xff] }
 0x20a   : > { %1677 = vmatprep.subr.mxu1 %v1448_v48  ;;  %2242 = vmatmul.mubr.msk.f32.gmra.mxu1 %vm727_vm8, %v3539_v2  ;;  %v1621_v48 = vmul.f32 %v1610_v23, %v3985_v11  ;;  %v3660_v11 = vld [vmem:[%s2493_s27 + $0x58] sm:$0xff] }
 0x20b   : > { %1678 = vmatpush1.msra.mxu1 %v1447_v50  ;;  %1277 = vmatprep.mubr.f32.mxu1 %v3974_v52  ;;  %v3986_v50 = vld [vmem:[#allocation19_spill] sm:$0xff] }
 0x20c   : > { %1679 = vmatprep.subr.mxu1 %v1446_v51  ;;  %v1620_v4 = vmul.f32 %v1614_v21, %v3986_v50  ;;  %v1570_v51 = vrot.slane %v2258_v43, %v2642_v14  ;;  %v3648_v43 = vld [vmem:[%s2493_s27 + $0x70] sm:$0xff]  ;;  %v3668_v50 = vld [vmem:[%s2493_s27 + $0x48] sm:$0xff] }
 0x20d   : > { %1680 = vmatpush1.msra.mxu1 %v1445_v12  ;;  %v3987_v12 = vld [vmem:[#allocation18_spill] sm:$0xff] }
 0x20e   : > { %1681 = vmatprep.subr.mxu1 %v1444_v8  ;;  %2243 = vmatmul.mubr.msk.f32.gmra.mxu1 %vm727_vm8, %v3554_v54  ;;  %v1619_v8 = vmul.f32 %v1610_v23, %v3987_v12  ;;  %v1574_v15 = vmul.f32 %v1570_v51, %v3996_v46  ;;  %v4006_v12 = vld [vmem:[#allocation39_spill] sm:$0xff]  ;;  %v2424_v46 = vld [vmem:[%s3897_s2 + $0xa0] sm:$0xff] }
 0x20f   : > { %1682 = vmatpush1.msra.mxu1 %v1443_v58  ;;  %1283 = vmatprep.mubr.f32.mxu1 %v3974_v52  ;;  %v3988_v58 = vld [vmem:[#allocation21_spill] sm:$0xff] }
 0x210   : > { %1683 = vmatprep.subr.mxu1 %v1442_v59  ;;  %v1618_v53 = vmul.f32 %v1614_v21, %v3988_v58  ;;  %v3989_v59 = vld [vmem:[#allocation20_spill] sm:$0xff]  ;;  %v4008_v58 = vld [vmem:[#allocation41_spill] sm:$0xff] }
 0x211   : > { %1684 = vmatpush1.msra.mxu1 %v1441_v61  ;;  %v1617_v61 = vmul.f32 %v1610_v23, %v3989_v59  ;;  %v4002_v23 = vld [vmem:[#allocation35_spill] sm:$0xff]  ;;  %v2411_v59 = vld [vmem:[%s3897_s2 + $0x18] sm:$0xff] }
 0x212   : > { %1685 = vmatprep.subr.mxu1 %v1404_v9  ;;  %2244 = vmatmul.mubr.msk.f32.gmra.mxu1 %vm727_vm8, %v3568_v63  ;;  %v3990_v9 = vld [vmem:[#allocation23_spill] sm:$0xff] }
 0x213   : > { %1686 = vmatpush1.msra.mxu1 %v1403_v56  ;;  %1289 = vmatprep.mubr.f32.mxu1 %v3974_v52  ;;  %v1580_v56 = vmul.f32 %v1570_v51, %v3990_v9  ;;  %v2412_v9 = vld [vmem:[%s3897_s2 + $0x38] sm:$0xff] }
 0x214   : > { %1687 = vmatprep.subr.mxu1 %v1402_v22  ;;  %v1579_v22 = vmul.f32 %v1566_v10, %v3991_v18  ;;  %v4012_v18 = vld [vmem:[#allocation45_spill] sm:$0xff] }
 0x215   : > { %1688 = vmatpush1.msra.mxu1 %v1401_v20  ;;  %v2257_v20 = vld [vmem:[%s3896_s1 + $0x5] ss:$8 sm:$0x3] }
 0x216   : > { %1689 = vmatprep.subr.mxu1 %v1400_v35  ;;  %2245 = vmatmul.mubr.msk.f32.gmra.mxu1 %vm727_vm8, %v3583_v32  ;;  %v3992_v35 = vld [vmem:[#allocation25_spill] sm:$0xff] }
 0x217   : > { %1690 = vmatpush1.msra.mxu1 %v1399_v39  ;;  %1733 = vmatprep.mubr.f32.mxu1 %v2400_v41  ;;  %v1578_v60 = vmul.f32 %v1570_v51, %v3992_v35  ;;  %v3993_v39 = vld [vmem:[#allocation24_spill] sm:$0xff]  ;;  %v1526_v41 = vrot.slane %v2257_v20, %v2642_v14  ;;  %v4000_v14 = vld [vmem:[#allocation33_spill] sm:$0xff] }
 0x218   : > { %1691 = vmatprep.subr.mxu1 %v1398_v42  ;;  %v1577_v27 = vmul.f32 %v1566_v10, %v3993_v39  ;;  %v3994_v42 = vld [vmem:[#allocation27_spill] sm:$0xff]  ;;  %v2414_v35 = vld [vmem:[%s3897_s2 + $0x50] sm:$0xff] }
 0x219   : > { %1692 = vmatpush1.msra.mxu1 %v1397_v0  ;;  %v1576_v0 = vmul.f32 %v1570_v51, %v3994_v42  ;;  %v1534_v1 = vmul.f32 %v1526_v41, %v4000_v14  ;;  %v1532_v38 = vmul.f32 %v1526_v41, %v4002_v23  ;;  %v2409_v51 = vld [vmem:[%s3897_s2] sm:$0xff]  ;;  %v2416_v39 = vld [vmem:[%s3897_s2 + $0x68] sm:$0xff] }
 0x21a   : > { %1693 = vmatprep.subr.mxu1 %v1360_v6  ;;  %v3995_v6 = vld [vmem:[#allocation26_spill] sm:$0xff] }
 0x21b   : > { %1694 = vmatpush1.msra.mxu1 %v1359_v3  ;;  %v1575_v44 = vmul.f32 %v1566_v10, %v3995_v6  ;;  %v1522_v3 = vrot.slane %v2257_v20, %v2640_v13  ;;  %v2413_v20 = vld [vmem:[%s3897_s2 + $0x30] sm:$0xff]  ;;  %v2418_v42 = vld [vmem:[%s3897_s2 + $0x80] sm:$0xff] }
 0x21c   : > { %1695 = vmatprep.subr.mxu1 %v1358_v55  ;;  %v3997_v55 = vld [vmem:[#allocation28_spill] sm:$0xff] }
 0x21d   : > { %1696 = vmatpush1.msra.mxu1 %v1357_v5  ;;  %v1573_v49 = vmul.f32 %v1566_v10, %v3997_v55  ;;  %v3998_v5 = vld [vmem:[#allocation31_spill] sm:$0xff]  ;;  %v2410_v10 = vld [vmem:[%s3897_s2 + $0x20] sm:$0xff]  ;;  %v2421_v6 = vld [vmem:[%s3897_s2 + $0x90] sm:$0xff]  ;;  %v3744_v55 = vpop.permute.xlu1 %1036 }
 0x21e   : > { %1697 = vmatprep.subr.mxu1 %v1356_v19  ;;  %v1536_v28 = vmul.f32 %v1526_v41, %v3998_v5  ;;  %v3999_v19 = vld [vmem:[#allocation30_spill] sm:$0xff] }
 0x21f   : > { %1698 = vmatpush1.msra.mxu1 %v1355_v16  ;;  %v1535_v21 = vmul.f32 %v1522_v3, %v3999_v19  ;;  %v4001_v16 = vld [vmem:[#allocation32_spill] sm:$0xff] }
 0x220   : > { %1699 = vmatprep.subr.mxu1 %v1354_v17  ;;  %v1533_v13 = vmul.f32 %v1522_v3, %v4001_v16  ;;  %v4003_v17 = vld [vmem:[#allocation34_spill] sm:$0xff] }
 0x221   : > { %1700 = vmatpush1.msra.mxu1 %v1353_v34  ;;  %v1531_v57 = vmul.f32 %v1522_v3, %v4003_v17  ;;  %v4004_v34 = vld [vmem:[#allocation37_spill] sm:$0xff]  ;;  %v3755_v23 = vpop.permute.xlu1 %1046 }
 0x222   : > { %1701 = vmatprep.subr.mxu1 %v1624_v62  ;;  %v1530_v36 = vmul.f32 %v1526_v41, %v4004_v34  ;;  %v4005_v62 = vld [vmem:[#allocation36_spill] sm:$0xff]  ;;  %v2420_v41 = vld [vmem:[%s3897_s2 + $0x98] sm:$0xff] }
 0x223   : > { %1702 = vmatpush2.msra.mxu1 %v1623_v7  ;;  %v1529_v37 = vmul.f32 %v1522_v3, %v4005_v62  ;;  %v3644_v7 = vld [vmem:[%s2493_s27 + $0x78] sm:$0xff]  ;;  %v2423_v3 = vld [vmem:[%s3897_s2 + $0xa8] sm:$0xff] }
 0x224   : > { %1703 = vmatprep.subr.mxu1 %v1622_v47  ;;  %v3656_v47 = vld [vmem:[%s2493_s27 + $0x60] sm:$0xff] }
 0x225   : > { %1704 = vmatpush2.msra.mxu1 %v1621_v48  ;;  %v3664_v48 = vld [vmem:[%s2493_s27 + $0x50] sm:$0xff] }
 0x226   : > { %1705 = vmatprep.subr.mxu1 %v1620_v4  ;;  %v3672_v4 = vld [vmem:[%s2493_s27 + $0x40] sm:$0xff] }
 0x227   : > { %1706 = vmatpush2.msra.mxu1 %v1619_v8  ;;  %v4007_v8 = vld [vmem:[#allocation38_spill] sm:$0xff] }
 0x228   : > { %1707 = vmatprep.subr.mxu1 %v1618_v53  ;;  %v4009_v53 = vld [vmem:[#allocation40_spill] sm:$0xff] }
 0x229   : > { %1708 = vmatpush2.msra.mxu1 %v1617_v61  ;;  %v4010_v61 = vld [vmem:[#allocation43_spill] sm:$0xff] }
 0x22a   : > { %1709 = vmatprep.subr.mxu1 %v1580_v56  ;;  %v4011_v56 = vld [vmem:[#allocation42_spill] sm:$0xff] }
 0x22b   : > { %1710 = vmatpush2.msra.mxu1 %v1579_v22  ;;  %v4013_v22 = vld [vmem:[#allocation44_spill] sm:$0xff] }
 0x22c   : > { %1711 = vmatprep.subr.mxu1 %v1578_v60  ;;  %v2415_v60 = vld [vmem:[%s3897_s2 + $0x48] sm:$0xff] }
 0x22d   : > { %1712 = vmatpush2.msra.mxu1 %v1577_v27  ;;  %v2417_v27 = vld [vmem:[%s3897_s2 + $0x60] sm:$0xff] }
 0x22e   : > { %1713 = vmatprep.subr.mxu1 %v1576_v0  ;;  %v2419_v0 = vld [vmem:[%s3897_s2 + $0x78] sm:$0xff] }
 0x22f   : > { %1714 = vmatpush2.msra.mxu1 %v1575_v44  ;;  %v2422_v44 = vld [vmem:[%s3897_s2 + $0xb0] sm:$0xff] }
 0x230   : > { %1715 = vmatprep.subr.mxu1 %v1574_v15  ;;  %v2425_v15 = vld [vmem:[%s3897_s2 + $0xb8] sm:$0xff] }
 0x231   : > { %1716 = vmatpush2.msra.mxu1 %v1573_v49 }
 0x232   : > { %1717 = vmatprep.subr.mxu1 %v1536_v28 }
 0x233   : > { %1718 = vmatpush2.msra.mxu1 %v1535_v21  ;;  %v3749_v21 = vpop.permute.xlu0 %1041 }
 0x234   : > { %1719 = vmatprep.subr.mxu1 %v1534_v1 }
 0x235   : > { %1720 = vmatpush2.msra.mxu1 %v1533_v13 }
 0x236   : > { %1721 = vmatprep.subr.mxu1 %v1532_v38 }
 0x237   : > { %1722 = vmatpush2.msra.mxu1 %v1531_v57 }
 0x238   : > { %1723 = vmatprep.subr.mxu1 %v1530_v36  ;;  %v3761_v36 = vpop.permute.xlu0 %1149 }
 0x239   : > { %1724 = vmatpush2.msra.mxu1 %v1529_v37 }
 0x23a   : > { %1725 = vmatprep.subr.mxu1 %v3644_v7 }
 0x23b   : > { %1726 = vmatpush2.msra.mxu1 %v3648_v43 }
 0x23c   : > { %1727 = vmatprep.subr.mxu1 %v3652_v45 }
 0x23d   : > { %1728 = vmatpush2.msra.mxu1 %v3656_v47 }
 0x23e   : > { %1729 = vmatprep.subr.mxu1 %v3660_v11 }
 0x23f   : > { %1730 = vmatpush2.msra.mxu1 %v3664_v48 }
 0x240   : > { %1731 = vmatprep.subr.mxu1 %v3668_v50 }
 0x241   : > { %1732 = vmatpush2.msra.mxu1 %v3672_v4 }
 0x242   : > { %1734 = vmatmul.mubr.f32.vlgmr.msra.gmra.mxu1 %v2409_v51  ;;  %2299 = vmatprep.subr.mxu1 %v4006_v12 }
 0x243   : > { %2303 = vmatpush1.msra.mxu1 %v4007_v8  ;;  %1739 = vmatprep.mubr.f32.mxu1 %v2410_v10  ;;  %v3767_v8 = vpop.permute.xlu1 %1154 }
 0x244   : > { %2300 = vmatprep.subr.mxu1 %v4008_v58 }
 0x245   : > { %2304 = vmatpush1.msra.mxu1 %v4009_v53 }
 0x246   : > { %1740 = vmatmul.mubr.f32.gmra.mxu1 %v2411_v59  ;;  %2301 = vmatprep.subr.mxu1 %v4010_v61  ;;  %v3773_v61 = vpop.permute.xlu0 %1159 }
 0x247   : > { %1745 = vmatprep.mubr.f32.mxu1 %v2412_v9  ;;  %2305 = vmatpush1.msra.mxu1 %v4011_v56  ;;  %4014 = vst [vmem:[#allocation7_spill] sm:$0xff] %v3773_v61 }
 0x248   : > { %2302 = vmatprep.subr.mxu1 %v4012_v18 }
 0x249   : > { %2306 = vmatpush1.msra.mxu1 %v4013_v22 }
 0x24a   : > { %1746 = vmatmul.mubr.f32.gmra.mxu1 %v2413_v20  ;;  %v3779_v20 = vpop.permute.xlu1 %1164 }
 0x24b   : > { %1751 = vmatprep.mubr.f32.mxu1 %v2414_v35  ;;  %4015 = vst [vmem:[#allocation8_spill] sm:$0xff] %v3779_v20 }
 0x24e   : > { %1752 = vmatmul.mubr.f32.gmra.mxu1 %v2415_v60 }
 0x24f   : > { %1757 = vmatprep.mubr.f32.mxu1 %v2416_v39 }
 0x252   : > { %1758 = vmatmul.mubr.f32.gmra.mxu1 %v2417_v27 }
 0x253   : > { %1763 = vmatprep.mubr.f32.mxu1 %v2418_v42  ;;  %v3785_v42 = vpop.permute.xlu0 %1169 }
 0x254   : > { %4016 = vst [vmem:[#allocation9_spill] sm:$0xff] %v3785_v42 }
 0x256   : > { %1764 = vmatmul.mubr.f32.gmra.mxu1 %v2419_v0 }
 0x257   : > { %1769 = vmatprep.mubr.f32.mxu1 %v2420_v41 }
 0x25a   : > { %1770 = vmatmul.mubr.f32.gmra.mxu1 %v2421_v6 }
 0x25b   : > { %1775 = vmatprep.mubr.f32.mxu1 %v2422_v44 }
 0x25e   : > { %1776 = vmatmul.mubr.f32.gmra.mxu1 %v2423_v3  ;;  %v3791_v3 = vpop.permute.xlu1 %1174 }
 0x25f   : > { %1882 = vmatprep.mubr.f32.mxu1 %v3974_v52  ;;  %4017 = vst [vmem:[#allocation10_spill] sm:$0xff] %v3791_v3 }
 0x262   : > { %2267 = vmatmul.mubr.msk.f32.vlgmr.msra.gmra.mxu1 %vm727_vm8, %v2424_v46 }
 0x263   : > { %1888 = vmatprep.mubr.f32.mxu1 %v3974_v52 }
 0x266   : > { %2268 = vmatmul.mubr.msk.f32.gmra.mxu1 %vm727_vm8, %v2425_v15 }
 0x2b6   : > { %v1124_v49 = vpop.f32.mrf.mxu1 }
 0x2b7   : > { %v1125_v5 = vadd.f32 %v1124_v49, %v3744_v55 }
 0x2b8   : > { %v1126_v28 = vpop.f32.mrf.mxu1 }
 0x2b9   : > { %1141 = vst [vmem:[%s3742_s28] sm:$0xff] %v1125_v5  ;;  %v1127_v19 = vadd.f32 %v1126_v28, %v3744_v55  ;;  %v1848_v28 = vpop.f32.mrf.mxu0 }
 0x2ba   : > { %v1130_v14 = vpop.f32.mrf.mxu1 }
 0x2bb   : > { %1142 = vst [vmem:[%s3742_s28 + $0x8] sm:$0xff] %v1127_v19  ;;  %v1131_v1 = vadd.f32 %v1130_v14, %v3749_v21  ;;  %v1850_v19 = vpop.f32.mrf.mxu0 }
 0x2bc   : > { %v1132_v16 = vpop.f32.mrf.mxu1 }
 0x2bd   : > { %1143 = vst [vmem:[%s3742_s28 + $0x10] sm:$0xff] %v1131_v1  ;;  %v1133_v13 = vadd.f32 %v1132_v16, %v3749_v21  ;;  %v1854_v14 = vpop.f32.mrf.mxu0 }
 0x2be   : > { %v1136_v38 = vpop.f32.mrf.mxu1 }
 0x2bf   : > { %1144 = vst [vmem:[%s3742_s28 + $0x18] sm:$0xff] %v1133_v13  ;;  %v1137_v17 = vadd.f32 %v1136_v38, %v3755_v23  ;;  %v1856_v1 = vpop.f32.mrf.mxu0 }
 0x2c0   : > { %v1138_v57 = vpop.f32.mrf.mxu1 }
 0x2c1   : > { %1145 = vst [vmem:[%s3742_s28 + $0x20] sm:$0xff] %v1137_v17  ;;  %v1139_v34 = vadd.f32 %v1138_v57, %v3755_v23  ;;  %v1860_v38 = vpop.f32.mrf.mxu0  ;;  %v4018_v17 = vld [vmem:[#allocation5_spill] sm:$0xff] }
 0x2c2   : > { %v1261_v62 = vpop.f32.mrf.mxu1 }
 0x2c3   : > { %1146 = vst [vmem:[%s3742_s28 + $0x28] sm:$0xff] %v1139_v34  ;;  %v1262_v37 = vadd.f32 %v1261_v62, %v3761_v36 }
 0x2c4   : > { %v1263_v51 = vpop.f32.mrf.mxu1 }
 0x2c5   : > { %1296 = vst [vmem:[%s3742_s28 + $0x30] sm:$0xff] %v1262_v37  ;;  %v1264_v12 = vadd.f32 %v1263_v51, %v3761_v36  ;;  %v1862_v37 = vpop.f32.mrf.mxu0 }
 0x2c6   : > { %v1267_v10 = vpop.f32.mrf.mxu1 }
 0x2c7   : > { %1297 = vst [vmem:[%s3742_s28 + $0x38] sm:$0xff] %v1264_v12  ;;  %v1268_v58 = vadd.f32 %v1267_v10, %v3767_v8  ;;  %v4019_v12 = vld [vmem:[#allocation4_spill] sm:$0xff] }
 0x2c8   : > { %v1269_v53 = vpop.f32.mrf.mxu1 }
 0x2c9   : > { %1298 = vst [vmem:[%s3742_s28 + $0x40] sm:$0xff] %v1268_v58  ;;  %v1270_v59 = vadd.f32 %v1269_v53, %v3767_v8 }
 0x2ca   : > { %v1273_v9 = vpop.f32.mrf.mxu1 }
 0x2cb   : > { %1299 = vst [vmem:[%s3742_s28 + $0x48] sm:$0xff] %v1270_v59  ;;  %v1274_v56 = vadd.f32 %v1273_v9, %v3773_v61  ;;  %v4020_v59 = vld [vmem:[#allocation2_spill] sm:$0xff] }
 0x2cc   : > { %v1275_v18 = vpop.f32.mrf.mxu1 }
 0x2cd   : > { %1300 = vst [vmem:[%s3742_s28 + $0x50] sm:$0xff] %v1274_v56  ;;  %v1276_v22 = vadd.f32 %v1275_v18, %v3773_v61 }
 0x2ce   : > { %v1279_v35 = vpop.f32.mrf.mxu1 }
 0x2cf   : > { %1301 = vst [vmem:[%s3742_s28 + $0x58] sm:$0xff] %v1276_v22  ;;  %v1280_v60 = vadd.f32 %v1279_v35, %v3779_v20  ;;  %v1866_v35 = vpop.f32.mrf.mxu0 }
 0x2d0   : > { %v1281_v39 = vpop.f32.mrf.mxu1 }
 0x2d1   : > { %1302 = vst [vmem:[%s3742_s28 + $0x60] sm:$0xff] %v1280_v60  ;;  %v1282_v27 = vadd.f32 %v1281_v39, %v3779_v20 }
 0x2d2   : > { %v1285_v0 = vpop.f32.mrf.mxu1 }
 0x2d3   : > { %1303 = vst [vmem:[%s3742_s28 + $0x68] sm:$0xff] %v1282_v27  ;;  %v1286_v41 = vadd.f32 %v1285_v0, %v3785_v42 }
 0x2d4   : > { %v1287_v6 = vpop.f32.mrf.mxu1 }
 0x2d5   : > { %1304 = vst [vmem:[%s3742_s28 + $0x70] sm:$0xff] %v1286_v41  ;;  %v1288_v44 = vadd.f32 %v1287_v6, %v3785_v42 }
 0x2d6   : > { %v1291_v46 = vpop.f32.mrf.mxu1 }
 0x2d7   : > { %1305 = vst [vmem:[%s3742_s28 + $0x78] sm:$0xff] %v1288_v44  ;;  %v1292_v15 = vadd.f32 %v1291_v46, %v3791_v3  ;;  %v4021_v44 = vld [vmem:[#allocation3_spill] sm:$0xff] }
 0x2d8   : > { %v1293_v49 = vpop.f32.mrf.mxu1 }
 0x2d9   : > { %1306 = vst [vmem:[%s3742_s28 + $0x80] sm:$0xff] %v1292_v15  ;;  %v1294_v5 = vadd.f32 %v1293_v49, %v3791_v3 }
 0x2db   : > { %1307 = vst [vmem:[%s3742_s28 + $0x88] sm:$0xff] %v1294_v5 }
 0x302   : > { %v1735_v16 = vpop.f32.mrf.mxu1 }
 0x303   : > { %v1736_v18 = vadd.f32 %v1735_v16, %v4018_v17 }
 0x304   : > { %v1737_v13 = vpop.f32.mrf.mxu1 }
 0x305   : > { %v1738_v57 = vadd.f32 %v1737_v13, %v4018_v17  ;;  %v1849_v49 = vadd.f32 %v1848_v28, %v1736_v18  ;;  %v1868_v13 = vpop.f32.mrf.mxu0 }
 0x306   : > { %v1741_v34 = vpop.f32.mrf.mxu1 }
 0x307   : > { %v1851_v51 = vadd.f32 %v1850_v19, %v1738_v57  ;;  %v1742_v58 = vadd.f32 %v1741_v34, %v4019_v12 }
 0x308   : > { %v1743_v62 = vpop.f32.mrf.mxu1 }
 0x309   : > { %v1744_v10 = vadd.f32 %v1743_v62, %v4019_v12  ;;  %v1896_v60 = vmul.f32 0.5, %v1851_v51  ;;  %v1855_v0 = vadd.f32 %v1854_v14, %v1742_v58  ;;  %v1895_v62 = vmul.f32 0.5, %v1849_v49 }
 0x30a   : > { %v1747_v53 = vpop.f32.mrf.mxu1 }
 0x30b   : > { %v1748_v9 = vadd.f32 %v1747_v53, %v4020_v59  ;;  %v1857_v56 = vadd.f32 %v1856_v1, %v1744_v10  ;;  %2360 = vtanh.f32 %v1896_v60  ;;  %v1897_v57 = vmul.f32 0.5, %v1855_v0  ;;  %v1872_v10 = vpop.f32.mrf.mxu0 }
 0x30c   : > { %v1749_v22 = vpop.f32.mrf.mxu1 }
 0x30d   : > { %v1750_v39 = vadd.f32 %v1749_v22, %v4020_v59  ;;  %v1861_v27 = vadd.f32 %v1860_v38, %v1748_v9  ;;  %v1898_v41 = vmul.f32 0.5, %v1857_v56  ;;  %v1874_v59 = vpop.f32.mrf.mxu0 }
 0x30e   : > { %v1753_v6 = vpop.f32.mrf.mxu1 }
 0x30f   : > { %v1754_v46 = vadd.f32 %v1753_v6, %v4021_v44  ;;  %v1863_v15 = vadd.f32 %v1862_v37, %v1750_v39  ;;  %v1899_v5 = vmul.f32 0.5, %v1861_v27  ;;  %2362 = vtanh.f32 %v1898_v41  ;;  %v1878_v39 = vpop.f32.mrf.mxu0 }
 0x310   : > { %v1755_v19 = vpop.f32.mrf.mxu1 }
 0x311   : > { %v1900_v1 = vmul.f32 0.5, %v1863_v15  ;;  %v1756_v16 = vadd.f32 %v1755_v19, %v4021_v44  ;;  %v1867_v17 = vadd.f32 %v1866_v35, %v1754_v46  ;;  %v4022_v15 = vld [vmem:[#allocation6_spill] sm:$0xff] }
 0x312   : > { %v1759_v34 = vpop.f32.mrf.mxu1 }
 0x313   : > { %2364 = vtanh.f32 %v1900_v1  ;;  %v1901_v38 = vmul.f32 0.5, %v1867_v17  ;;  %v1869_v14 = vadd.f32 %v1868_v13, %v1756_v16  ;;  %v1760_v46 = vadd.f32 %v1759_v34, %v3113_v33 }
 0x314   : > { %2366 = vtanh.f32 %v1899_v5  ;;  %v1761_v51 = vpop.f32.mrf.mxu1 }
 0x315   : > { %2368 = vtanh.f32 %v1901_v38  ;;  %v1902_v37 = vmul.f32 0.5, %v1869_v14  ;;  %v1762_v13 = vadd.f32 %v1761_v51, %v3113_v33 }
 0x316   : > { %2370 = vtanh.f32 %v1897_v57  ;;  %v1765_v28 = vpop.f32.mrf.mxu1 }
 0x317   : > { %2372 = vtanh.f32 %v1902_v37  ;;  %v1766_v1 = vadd.f32 %v1765_v28, %v3109_v24 }
 0x318   : > { %2374 = vtanh.f32 %v1895_v62  ;;  %v1767_v12 = vpop.f32.mrf.mxu1  ;;  %v2361_v9 = vpop.eup %2360 }
 0x319   : > { %v1768_v16 = vadd.f32 %v1767_v12, %v3109_v24  ;;  %v1880_v62 = vpop.f32.mrf.mxu0 }
 0x31a   : > { %v1771_v58 = vpop.f32.mrf.mxu1 }
 0x31b   : > { %v1881_v20 = vadd.f32 %v1880_v62, %v1768_v16 }
 0x31c   : > { %v1773_v53 = vpop.f32.mrf.mxu1  ;;  %v2363_v18 = vpop.eup %2362 }
 0x31d   : > { %v1774_v49 = vadd.f32 %v1773_v53, %v4022_v15  ;;  %v1914_v38 = vmul.f32 0.5, %v2363_v18  ;;  %v1772_v53 = vadd.f32 %v1771_v58, %v4022_v15  ;;  %v1875_v15 = vadd.f32 %v1874_v59, %v1762_v13 }
 0x31e   : > { %v1777_v56 = vpop.f32.mrf.mxu1 }
 0x31f   : > { %v1778_v37 = vadd.f32 %v1777_v56, %v3090_v29  ;;  %v1922_v61 = vadd.f32 0.5, %v1914_v38 }
 0x320   : > { %v2365_v22 = vpop.eup %2364  ;;  %v1779_v35 = vpop.f32.mrf.mxu1 }
 0x321   : > { %v2367_v60 = vpop.eup %2366  ;;  %v1916_v6 = vmul.f32 0.5, %v2365_v22  ;;  %v1780_v51 = vadd.f32 %v1779_v35, %v3090_v29 }
 0x322   : > { %v2369_v27 = vpop.eup %2368  ;;  %v1884_v0 = vpop.f32.mrf.mxu1  ;;  %v1915_v19 = vmul.f32 0.5, %v2367_v60 }
 0x323   : > { %v2371_v41 = vpop.eup %2370  ;;  %v1917_v44 = vmul.f32 0.5, %v2369_v27  ;;  %v1912_v27 = vmul.f32 0.5, %v2361_v9  ;;  %v1924_v42 = vadd.f32 0.5, %v1916_v6  ;;  %v1885_v18 = vadd.f32 %v1884_v0, %v1772_v53 }
 0x324   : > { %v2373_v5 = vpop.eup %2372  ;;  %v1886_v17 = vpop.f32.mrf.mxu1  ;;  %v1913_v34 = vmul.f32 0.5, %v2371_v41  ;;  %v1923_v12 = vadd.f32 0.5, %v1915_v19  ;;  %v1930_v19 = vmul.f32 %v3660_v11, %v1922_v61 }
 0x325   : > { %v2375_v57 = vpop.eup %2374  ;;  %v1918_v14 = vmul.f32 0.5, %v2373_v5  ;;  %v1887_v22 = vadd.f32 %v1886_v17, %v1774_v49  ;;  %v1925_v3 = vadd.f32 0.5, %v1917_v44  ;;  %v1879_v44 = vadd.f32 %v1878_v39, %v1766_v1 }
 0x326   : > { %v1890_v60 = vpop.f32.mrf.mxu1  ;;  %v1911_v24 = vmul.f32 0.5, %v2375_v57  ;;  %v1921_v41 = vadd.f32 0.5, %v1913_v34  ;;  %v1920_v6 = vadd.f32 0.5, %v1912_v27  ;;  %v1932_v29 = vmul.f32 %v3652_v45, %v1924_v42  ;;  %v4023_v34 = vld [vmem:[#allocation7_spill] sm:$0xff] }
 0x327   : > { %v1926_v33 = vadd.f32 0.5, %v1918_v14  ;;  %v1891_v28 = vadd.f32 %v1890_v60, %v1778_v37  ;;  %2376 = vtanh.f32 %v1887_v22  ;;  %v1933_v58 = vmul.f32 %v3648_v43, %v1925_v3 }
 0x328   : > { %v1892_v5 = vpop.f32.mrf.mxu1  ;;  %v1919_v35 = vadd.f32 0.5, %v1911_v24  ;;  %v1873_v49 = vadd.f32 %v1872_v10, %v1760_v46  ;;  %v1931_v0 = vmul.f32 %v3656_v47, %v1923_v12  ;;  %v1929_v3 = vmul.f32 %v3664_v48, %v1921_v41 }
 0x329   : > { %v1893_v56 = vadd.f32 %v1892_v5, %v1780_v51  ;;  %v1934_v9 = vmul.f32 %v3644_v7, %v1926_v33  ;;  %2378 = vtanh.f32 %v1891_v28  ;;  %v1928_v59 = vmul.f32 %v3668_v50, %v1920_v6  ;;  %v4024_v51 = vld [vmem:[#allocation8_spill] sm:$0xff] }
 0x32a   : > { %v1927_v42 = vmul.f32 %v3672_v4, %v1919_v35 }
 0x32b   : > { %2380 = vtanh.f32 %v1893_v56  ;;  %1975 = vmatprep.subr.mxu0 %v1934_v9 }
 0x32c   : > { %2382 = vtanh.f32 %v1885_v18  ;;  %1976 = vmatpush1.msra.mxu0 %v1933_v58  ;;  %v4025_v18 = vld [vmem:[#allocation9_spill] sm:$0xff] }
 0x32d   : > { %2384 = vtanh.f32 %v1881_v20  ;;  %1977 = vmatprep.subr.mxu0 %v1932_v29 }
 0x32e   : > { %2386 = vtanh.f32 %v1879_v44  ;;  %1978 = vmatpush1.msra.mxu0 %v1931_v0  ;;  %v4026_v44 = vld [vmem:[#allocation10_spill] sm:$0xff] }
 0x32f   : > { %2388 = vtanh.f32 %v1875_v15  ;;  %1979 = vmatprep.subr.mxu0 %v1930_v19 }
 0x330   : > { %2390 = vtanh.f32 %v1873_v49  ;;  %1980 = vmatpush1.msra.mxu0 %v1929_v3 }
 0x331   : > { %1981 = vmatprep.subr.mxu0 %v1928_v59 }
 0x332   : > { %1982 = vmatpush1.msra.mxu0 %v1927_v42 }
 0x333   : > { %2269 = vmatmul.mubr.msk.f32.vlgmr.msra.gmra.mxu0 %vm727_vm8, %v3481_v31 }
 0x334   : > { %2021 = vmatprep.mubr.f32.mxu0 %v3974_v52  ;;  %v2377_v61 = vpop.eup %2376 }
 0x335   : > { %v1948_v31 = vmul.f32 %v3652_v45, %v2377_v61 }
 0x336   : > { %v2379_v20 = vpop.eup %2378 }
 0x337   : > { %2270 = vmatmul.mubr.msk.f32.gmra.mxu0 %vm727_vm8, %v3492_v25  ;;  %v1949_v1 = vmul.f32 %v3648_v43, %v2379_v20 }
 0x338   : > { %v2381_v10 = vpop.eup %2380  ;;  %2027 = vmatprep.mubr.f32.mxu0 %v3974_v52 }
 0x339   : > { %v2383_v39 = vpop.eup %2382  ;;  %v1950_v46 = vmul.f32 %v3644_v7, %v2381_v10 }
 0x33a   : > { %v2385_v13 = vpop.eup %2384  ;;  %v1947_v25 = vmul.f32 %v3656_v47, %v2383_v39 }
 0x33b   : > { %v2387_v16 = vpop.eup %2386  ;;  %2271 = vmatmul.mubr.msk.f32.gmra.mxu0 %vm727_vm8, %v3501_v40  ;;  %2065 = vmatprep.subr.mxu0 %v1950_v46  ;;  %v1946_v7 = vmul.f32 %v3660_v11, %v2385_v13 }
 0x33c   : > { %v2389_v17 = vpop.eup %2388  ;;  %2066 = vmatpush1.msra.mxu0 %v1949_v1  ;;  %2105 = vmatprep.mubr.f32.mxu0 %v3974_v52  ;;  %v1945_v43 = vmul.f32 %v3664_v48, %v2387_v16 }
 0x33d   : > { %v2391_v57 = vpop.eup %2390  ;;  %2067 = vmatprep.subr.mxu0 %v1948_v31  ;;  %v1944_v38 = vmul.f32 %v3668_v50, %v2389_v17 }
 0x33e   : > { %2068 = vmatpush1.msra.mxu0 %v1947_v25  ;;  %v1943_v40 = vmul.f32 %v3672_v4, %v2391_v57 }
 0x33f   : > { %2069 = vmatprep.subr.mxu0 %v1946_v7 }
 0x340   : > { %2070 = vmatpush1.msra.mxu0 %v1945_v43 }
 0x341   : > { %2071 = vmatprep.subr.mxu0 %v1944_v38 }
 0x342   : > { %2072 = vmatpush1.msra.mxu0 %v1943_v40 }
 0x343   : > { %2278 = vmatmul.mubr.msk.f32.vlgmr.msra.gmra.mxu0 %vm727_vm8, %v3511_v30 }
 0x344   : > { %2111 = vmatprep.mubr.f32.mxu0 %v3974_v52 }
 0x347   : > { %2279 = vmatmul.mubr.msk.f32.gmra.mxu0 %vm727_vm8, %v3525_v26 }
 0x348   : > { %2117 = vmatprep.mubr.f32.mxu0 %v3974_v52 }
 0x34b   : > { %2280 = vmatmul.mubr.msk.f32.gmra.mxu0 %vm727_vm8, %v3539_v2 }
 0x34c   : > { %2123 = vmatprep.mubr.f32.mxu0 %v3974_v52 }
 0x34f   : > { %2281 = vmatmul.mubr.msk.f32.gmra.mxu0 %vm727_vm8, %v3554_v54 }
 0x350   : > { %2129 = vmatprep.mubr.f32.mxu0 %v3974_v52 }
 0x353   : > { %2282 = vmatmul.mubr.msk.f32.gmra.mxu0 %vm727_vm8, %v3568_v63 }
 0x354   : > { %2135 = vmatprep.mubr.f32.mxu0 %v3974_v52 }
 0x357   : > { %2283 = vmatmul.mubr.msk.f32.gmra.mxu0 %vm727_vm8, %v3583_v32 }
 0x3f3   : > { %v2017_v30 = vpop.f32.mrf.mxu0 }
 0x3f4   : > { %v2018_v26 = vadd.f32 %v2017_v30, %v3744_v55 }
 0x3f5   : > { %v2019_v2 = vpop.f32.mrf.mxu0 }
 0x3f6   : > { %2272 = vst [vmem:[%s3742_s28 + $0x90] sm:$0xff] %v2018_v26  ;;  %v2020_v54 = vadd.f32 %v2019_v2, %v3744_v55 }
 0x3f7   : > { %v2023_v45 = vpop.f32.mrf.mxu0 }
 0x3f8   : > { %2273 = vst [vmem:[%s3742_s28 + $0x98] sm:$0xff] %v2020_v54  ;;  %v2024_v47 = vadd.f32 %v2023_v45, %v3749_v21 }
 0x3f9   : > { %v2025_v63 = vpop.f32.mrf.mxu0 }
 0x3fa   : > { %2274 = vst [vmem:[%s3742_s28 + $0xa0] sm:$0xff] %v2024_v47  ;;  %v2026_v52 = vadd.f32 %v2025_v63, %v3749_v21 }
 0x3fb   : > { %v2029_v32 = vpop.f32.mrf.mxu0 }
 0x3fc   : > { %2275 = vst [vmem:[%s3742_s28 + $0xa8] sm:$0xff] %v2026_v52  ;;  %v2030_v11 = vadd.f32 %v2029_v32, %v3755_v23 }
 0x3fd   : > { %v2031_v48 = vpop.f32.mrf.mxu0 }
 0x3fe   : > { %2276 = vst [vmem:[%s3742_s28 + $0xb0] sm:$0xff] %v2030_v11  ;;  %v2032_v50 = vadd.f32 %v2031_v48, %v3755_v23 }
 0x400   : > { %2277 = vst [vmem:[%s3742_s28 + $0xb8] sm:$0xff] %v2032_v50 }
 0x403   : > { %v2107_v4 = vpop.f32.mrf.mxu0 }
 0x404   : > { %v2108_v55 = vadd.f32 %v2107_v4, %v3761_v36 }
 0x405   : > { %v2109_v14 = vpop.f32.mrf.mxu0 }
 0x406   : > { %2284 = vst [vmem:[%s3742_s28 + $0xc0] sm:$0xff] %v2108_v55  ;;  %v2110_v21 = vadd.f32 %v2109_v14, %v3761_v36 }
 0x407   : > { %v2113_v62 = vpop.f32.mrf.mxu0 }
 0x408   : > { %2285 = vst [vmem:[%s3742_s28 + $0xc8] sm:$0xff] %v2110_v21  ;;  %v2114_v37 = vadd.f32 %v2113_v62, %v3767_v8 }
 0x409   : > { %v2115_v22 = vpop.f32.mrf.mxu0 }
 0x40a   : > { %2286 = vst [vmem:[%s3742_s28 + $0xd0] sm:$0xff] %v2114_v37  ;;  %v2116_v23 = vadd.f32 %v2115_v22, %v3767_v8 }
 0x40b   : > { %v2119_v27 = vpop.f32.mrf.mxu0 }
 0x40c   : > { %2287 = vst [vmem:[%s3742_s28 + $0xd8] sm:$0xff] %v2116_v23  ;;  %v2120_v53 = vadd.f32 %v2119_v27, %v4023_v34 }
 0x40d   : > { %v2121_v60 = vpop.f32.mrf.mxu0 }
 0x40e   : > { %2288 = vst [vmem:[%s3742_s28 + $0xe0] sm:$0xff] %v2120_v53  ;;  %v2122_v36 = vadd.f32 %v2121_v60, %v4023_v34 }
 0x40f   : > { %v2125_v33 = vpop.f32.mrf.mxu0 }
 0x410   : > { %2289 = vst [vmem:[%s3742_s28 + $0xe8] sm:$0xff] %v2122_v36  ;;  %v2126_v28 = vadd.f32 %v2125_v33, %v4024_v51 }
 0x411   : > { %v2127_v24 = vpop.f32.mrf.mxu0 }
 0x412   : > { %2290 = vst [vmem:[%s3742_s28 + $0xf0] sm:$0xff] %v2126_v28  ;;  %v2128_v8 = vadd.f32 %v2127_v24, %v4024_v51 }
 0x413   : > { %v2131_v12 = vpop.f32.mrf.mxu0 }
 0x414   : > { %2291 = vst [vmem:[%s3742_s28 + $0xf8] sm:$0xff] %v2128_v8  ;;  %v2132_v5 = vadd.f32 %v2131_v12, %v4025_v18 }
 0x415   : > { %v2133_v56 = vpop.f32.mrf.mxu0 }
 0x416   : > { %2292 = vst [vmem:[%s3742_s28 + $0x100] sm:$0xff] %v2132_v5  ;;  %v2134_v9 = vadd.f32 %v2133_v56, %v4025_v18 }
 0x417   : > { %v2137_v41 = vpop.f32.mrf.mxu0 }
 0x418   : > { %2293 = vst [vmem:[%s3742_s28 + $0x108] sm:$0xff] %v2134_v9  ;;  %v2138_v58 = vadd.f32 %v2137_v41, %v4026_v44 }
 0x419   : > { %v2139_v6 = vpop.f32.mrf.mxu0 }
 0x41a   : > { %2294 = vst [vmem:[%s3742_s28 + $0x110] sm:$0xff] %v2138_v58  ;;  %v2140_v15 = vadd.f32 %v2139_v6, %v4026_v44 }
 0x41c   : > { %2295 = vst [vmem:[%s3742_s28 + $0x118] sm:$0xff] %v2140_v15 }
 0x41d PF: > { %s16_s21 = sadd.s32 1, %s2432_s21  }
 0x41e   : > { %p13_p4 = scmp.ge.s32.totalorder %s16_s21, 4  }
 0x420   :  { %15 = sbr.rel (!%p13_p4) target bundleno = 1 (0x1), region = 83 }

</bundles_post_ra>
